<compile_context>
chip_gen: v6e
topology: v6e:2x2x1
jax: 0.10.0
libtpu: 0.0.40
codegen_flags: <defaults>
</compile_context>

<pallas_src>
from functools import partial

import jax
import jax.numpy as jnp
import numpy as np
from jax.experimental import pallas as pl
from jax.experimental.pallas import tpu as pltpu

EPS = 1e-5


def _round_up(v, m):
    return ((v + m - 1) // m) * m


def _device_budget():
    """(per-block x budget in bytes, scoped-VMEM limit) for the local TPU."""
    try:
        kind = jax.devices()[0].device_kind.lower()
    except Exception:  # pragma: no cover - defensive
        kind = ""
    if "v7" in kind or "tpu7" in kind:
        # v7x: only 64 MiB VMEM per TensorCore -> keep the footprint modest.
        return 4 << 20, 40 << 20
    if "v6" in kind or "v5" in kind:
        # 128 MiB physical VMEM: admit 4-8 MiB double-buffered x blocks.
        return 8 << 20, 64 << 20
    # Conservative default for older / unknown generations.
    return 2 << 20, 32 << 20


def _choose_tb(batch, target, sub):
    """Pick a batch tile: multiple of `sub`, divides round_up(batch, sub)
    (no hot-path padding), and <= half the batch so the parallel grid axis
    has >=2 steps (megacore / both v7x TensorCores)."""
    b8 = _round_up(batch, sub)
    cap = b8 if b8 < 2 * sub else b8 // 2
    cap = min(cap, max(sub, (int(target) // sub) * sub))
    best = sub
    for d in range(sub, cap + 1, sub):
        if b8 % d == 0:
            best = d
    return best, b8


def _attention_kernel(x_ref, w1_ref, b1_ref, w2_ref, out_ref, *,
                      c_in, c_out, t_pad, t_real):
    # x_ref  : VMEM (TB, Cin*Tpad)   -- channels flattened on 128-aligned lanes
    # w1_ref : SMEM (Cout*Cin,)      -- conv1 weight with BN1 scale folded in
    # b1_ref : SMEM (Cout,)          -- folded BN1 bias
    # w2_ref : SMEM (Cout,)          -- conv2 weight with BN2 scale folded in
    # out_ref: VMEM (TB, Tpad)       -- softmax over T (lane axis), f32
    cd = x_ref.dtype                           # compute dtype (f32 or bf16)

    z = None                                   # f32 logits accumulator
    for co in range(c_out):
        y = None
        for ci in range(c_in):
            w = w1_ref[co * c_in + ci].astype(cd)               # SMEM scalar
            term = w * x_ref[:, pl.ds(ci * t_pad, t_pad)]       # VPU FMA chain
            y = term if y is None else y + term
        s = jnp.maximum(y + b1_ref[co].astype(cd), 0.0)         # BN1 bias + ReLU
        contrib = (w2_ref[co].astype(cd) * s).astype(jnp.float32)
        z = contrib if z is None else z + contrib               # (TB, Tpad) f32

    if t_real != t_pad:                        # mask padded T lanes (static branch)
        lane = jax.lax.broadcasted_iota(jnp.int32, z.shape, 1)
        z = jnp.where(lane < t_real, z, -jnp.inf)

    # softmax over T; BN2 bias dropped (softmax shift invariance).
    z = z - jnp.max(z, axis=-1, keepdims=True)
    e = jnp.exp(z)
    inv = pl.reciprocal(jnp.sum(e, axis=-1, keepdims=True), approx=False)
    out_ref[...] = e * inv


def attention_forward(x, params, *, tb=None, compute_dtype=None):
    """x: (B, Cin, T). Returns (B, T) f32 softmax attention weights."""
    B, Cin, T = x.shape
    (w1, g1, bt1, m1, v1, w2, g2, bt2, m2, v2) = params
    Cout = w1.shape[0]
    # TODO(synk): for large Cin/Cout (>= ~64) switch to an MXU matmul variant;
    # this unrolled VPU path targets the small channel counts of this module.

    # Fold eval-mode BatchNorm into the conv weights (parameter glue, f32).
    inv_std1 = 1.0 / jnp.sqrt(v1 + EPS)
    w1f = ((g1 * inv_std1)[:, None] * w1).reshape(-1)    # (Cout*Cin,) flat SMEM
    b1f = bt1 - m1 * g1 * inv_std1                       # (Cout,)
    scale2 = (g2 / jnp.sqrt(v2 + EPS))[0]
    w2f = w2.reshape(Cout) * scale2                      # (Cout,); BN2 bias dropped

    in_dtype = jnp.dtype(compute_dtype) if compute_dtype is not None else jnp.dtype(x.dtype)
    sub = 16 if in_dtype == jnp.dtype(jnp.bfloat16) else 8

    # Lane-dense layout: pad T to a multiple of 128 so each channel slice and
    # the output slab are 128-lane aligned (no relayouts / masked stores).
    Tpad = _round_up(T, 128)

    blk_budget, vmem_limit = _device_budget()
    row_bytes = Cin * Tpad * in_dtype.itemsize + Tpad * 4   # in + out, per row
    target = tb if tb is not None else max(sub, blk_budget // (2 * row_bytes))
    tb_, B8 = _choose_tb(B, target, sub)

    if x.dtype != in_dtype:
        x = x.astype(in_dtype)                               # halves HBM read (bf16)
    pad_b, pad_t = B8 - B, Tpad - T
    if pad_b or pad_t:
        x = jnp.pad(x, ((0, pad_b), (0, 0), (0, pad_t)))     # at most sub-1 rows
    xf = x.reshape(B8, Cin * Tpad)                           # free when no T pad

    kernel = partial(_attention_kernel, c_in=Cin, c_out=Cout, t_pad=Tpad, t_real=T)
    out = pl.pallas_call(
        kernel,
        out_shape=jax.ShapeDtypeStruct((B8, Tpad), jnp.float32),
        grid=(B8 // tb_,),
        in_specs=[
            pl.BlockSpec((tb_, Cin * Tpad), lambda i: (i, 0)),      # x batch tile
            pl.BlockSpec(memory_space=pltpu.MemorySpace.SMEM),      # w1f (resident)
            pl.BlockSpec(memory_space=pltpu.MemorySpace.SMEM),      # b1f
            pl.BlockSpec(memory_space=pltpu.MemorySpace.SMEM),      # w2f
        ],
        out_specs=pl.BlockSpec((tb_, Tpad), lambda i: (i, 0)),      # lane-dense out
        compiler_params=pltpu.CompilerParams(
            dimension_semantics=("parallel",),
            vmem_limit_bytes=vmem_limit,
        ),
    )(xf, w1f, b1f, w2f)

    if pad_b or pad_t:
        out = out[:B, :T]
    return out


def attention_reference(x, params):
    """Pure-JAX reference mirroring the PyTorch forward (eval-mode BN)."""
    (w1, g1, bt1, m1, v1, w2, g2, bt2, m2, v2) = params
    y = jnp.einsum("oc,bct->bot", w1, x)                              # conv1 1x1
    y = (y - m1[None, :, None]) / jnp.sqrt(v1[None, :, None] + EPS)
    y = y * g1[None, :, None] + bt1[None, :, None]
    s = jnp.maximum(y, 0.0)                                           # ReLU
    z = jnp.einsum("oc,bct->bot", w2, s)[:, 0, :]                     # conv2 1x1
    z = (z - m2) / jnp.sqrt(v2 + EPS) * g2 + bt2                      # BN2
    return jax.nn.softmax(z, axis=1)


def init_params(key, inch, ouch):
    ks = jax.random.split(key, 6)
    w1 = jax.random.normal(ks[0], (ouch, inch), jnp.float32) * 0.3    # Conv2d(inch,ouch,1).weight
    g1 = 1.0 + 0.1 * jax.random.normal(ks[1], (ouch,), jnp.float32)   # BN1 gamma
    bt1 = 0.1 * jax.random.normal(ks[2], (ouch,), jnp.float32)        # BN1 beta
    m1 = 0.05 * jax.random.normal(ks[3], (ouch,), jnp.float32)        # BN1 running_mean
    v1 = 0.5 + jax.random.uniform(ks[4], (ouch,), jnp.float32)        # BN1 running_var (>0)
    w2 = jax.random.normal(ks[5], (1, ouch), jnp.float32) * 0.3       # Conv2d(ouch,1,1).weight
    g2 = jnp.array([1.1], jnp.float32)                                # BN2 gamma
    bt2 = jnp.array([0.05], jnp.float32)                              # BN2 beta
    m2 = jnp.array([0.02], jnp.float32)                               # BN2 running_mean
    v2 = jnp.array([0.9], jnp.float32)                                # BN2 running_var
    return (w1, g1, bt1, m1, v1, w2, g2, bt2, m2, v2)


if __name__ == "__main__":
    B, INCH, OUCH, T = 128, 4, 8, 128
    key = jax.random.PRNGKey(0)
    kx, kp = jax.random.split(key)
    x = jax.random.normal(kx, (B, INCH, T), jnp.float32)   # (B, Cin, T); torch unsqueezes W=1
    params = init_params(kp, INCH, OUCH)

    ref = jax.block_until_ready(attention_reference(x, params))

    # f32 path, auto-sized batch tile (>=2 parallel grid steps, no batch pad).
    out = jax.block_until_ready(attention_forward(x, params))
    assert out.shape == (B, T)
    np.testing.assert_allclose(np.asarray(out), np.asarray(ref), rtol=1e-5, atol=1e-5)
    np.testing.assert_allclose(np.asarray(out).sum(axis=1), np.ones(B), rtol=1e-5, atol=1e-5)

    # bf16 VALU path (v6e/v7x lever; numerically looser, still softmax-exact structure).
    out_bf = jax.block_until_ready(
        attention_forward(x, params, compute_dtype=jnp.bfloat16))
    np.testing.assert_allclose(np.asarray(out_bf), np.asarray(ref), rtol=0.0, atol=2e-2)

    print("KERNEL_OK")
</pallas_src>

<mosaic_0001>
module attributes {stable_mosaic.version = 11 : i64} {
  func.func @_attention_kernel(%arg0: i32, %arg1: memref<64x512xf32, #tpu.memory_space<vmem>>, %arg2: memref<32xf32, #tpu.memory_space<smem>>, %arg3: memref<8xf32, #tpu.memory_space<smem>>, %arg4: memref<8xf32, #tpu.memory_space<smem>>, %arg5: memref<64x128xf32, #tpu.memory_space<vmem>>) attributes {dimension_semantics = [#tpu.dimension_semantics<parallel>], iteration_bounds = array<i64: 2>, scalar_prefetch = 0 : i64, scratch_operands = 0 : i64, tpu.core_type = #tpu.core_type<tc>, window_params = [{transform_indices = @transform_0, window_bounds = array<i64: 64, 512>}, {transform_indices = @transform_1, window_bounds = array<i64: 32>}, {transform_indices = @transform_2, window_bounds = array<i64: 8>}, {transform_indices = @transform_3, window_bounds = array<i64: 8>}, {transform_indices = @transform_4, window_bounds = array<i64: 64, 128>}]} {
    %c0 = arith.constant 0 : index
    %0 = memref.load %arg2[%c0] : memref<32xf32, #tpu.memory_space<smem>>
    %c0_0 = arith.constant 0 : index
    %c0_1 = arith.constant 0 : index
    %1 = vector.load %arg1[%c0_0, %c0_1] : memref<64x512xf32, #tpu.memory_space<vmem>>, vector<64x128xf32>
    %2 = vector.broadcast %0 : f32 to vector<64x128xf32>
    %3 = arith.mulf %2, %1 : vector<64x128xf32>
    %c1 = arith.constant 1 : index
    %4 = memref.load %arg2[%c1] : memref<32xf32, #tpu.memory_space<smem>>
    %c0_2 = arith.constant 0 : index
    %c128 = arith.constant 128 : index
    %5 = vector.load %arg1[%c0_2, %c128] : memref<64x512xf32, #tpu.memory_space<vmem>>, vector<64x128xf32>
    %6 = vector.broadcast %4 : f32 to vector<64x128xf32>
    %7 = arith.mulf %6, %5 : vector<64x128xf32>
    %8 = arith.addf %3, %7 : vector<64x128xf32>
    %c2 = arith.constant 2 : index
    %9 = memref.load %arg2[%c2] : memref<32xf32, #tpu.memory_space<smem>>
    %c0_3 = arith.constant 0 : index
    %c256 = arith.constant 256 : index
    %10 = vector.load %arg1[%c0_3, %c256] : memref<64x512xf32, #tpu.memory_space<vmem>>, vector<64x128xf32>
    %11 = vector.broadcast %9 : f32 to vector<64x128xf32>
    %12 = arith.mulf %11, %10 : vector<64x128xf32>
    %13 = arith.addf %8, %12 : vector<64x128xf32>
    %c3 = arith.constant 3 : index
    %14 = memref.load %arg2[%c3] : memref<32xf32, #tpu.memory_space<smem>>
    %c0_4 = arith.constant 0 : index
    %c384 = arith.constant 384 : index
    %15 = vector.load %arg1[%c0_4, %c384] : memref<64x512xf32, #tpu.memory_space<vmem>>, vector<64x128xf32>
    %16 = vector.broadcast %14 : f32 to vector<64x128xf32>
    %17 = arith.mulf %16, %15 : vector<64x128xf32>
    %18 = arith.addf %13, %17 : vector<64x128xf32>
    %c0_5 = arith.constant 0 : index
    %19 = memref.load %arg3[%c0_5] : memref<8xf32, #tpu.memory_space<smem>>
    %20 = vector.broadcast %19 : f32 to vector<64x128xf32>
    %21 = arith.addf %18, %20 : vector<64x128xf32>
    %cst = arith.constant 0.000000e+00 : f32
    %22 = vector.broadcast %cst : f32 to vector<64x128xf32>
    %23 = arith.maximumf %21, %22 : vector<64x128xf32>
    %c0_6 = arith.constant 0 : index
    %24 = memref.load %arg4[%c0_6] : memref<8xf32, #tpu.memory_space<smem>>
    %25 = vector.broadcast %24 : f32 to vector<64x128xf32>
    %26 = arith.mulf %25, %23 : vector<64x128xf32>
    %c4 = arith.constant 4 : index
    %27 = memref.load %arg2[%c4] : memref<32xf32, #tpu.memory_space<smem>>
    %c0_7 = arith.constant 0 : index
    %c0_8 = arith.constant 0 : index
    %28 = vector.load %arg1[%c0_7, %c0_8] : memref<64x512xf32, #tpu.memory_space<vmem>>, vector<64x128xf32>
    %29 = vector.broadcast %27 : f32 to vector<64x128xf32>
    %30 = arith.mulf %29, %28 : vector<64x128xf32>
    %c5 = arith.constant 5 : index
    %31 = memref.load %arg2[%c5] : memref<32xf32, #tpu.memory_space<smem>>
    %c0_9 = arith.constant 0 : index
    %c128_10 = arith.constant 128 : index
    %32 = vector.load %arg1[%c0_9, %c128_10] : memref<64x512xf32, #tpu.memory_space<vmem>>, vector<64x128xf32>
    %33 = vector.broadcast %31 : f32 to vector<64x128xf32>
    %34 = arith.mulf %33, %32 : vector<64x128xf32>
    %35 = arith.addf %30, %34 : vector<64x128xf32>
    %c6 = arith.constant 6 : index
    %36 = memref.load %arg2[%c6] : memref<32xf32, #tpu.memory_space<smem>>
    %c0_11 = arith.constant 0 : index
    %c256_12 = arith.constant 256 : index
    %37 = vector.load %arg1[%c0_11, %c256_12] : memref<64x512xf32, #tpu.memory_space<vmem>>, vector<64x128xf32>
    %38 = vector.broadcast %36 : f32 to vector<64x128xf32>
    %39 = arith.mulf %38, %37 : vector<64x128xf32>
    %40 = arith.addf %35, %39 : vector<64x128xf32>
    %c7 = arith.constant 7 : index
    %41 = memref.load %arg2[%c7] : memref<32xf32, #tpu.memory_space<smem>>
    %c0_13 = arith.constant 0 : index
    %c384_14 = arith.constant 384 : index
    %42 = vector.load %arg1[%c0_13, %c384_14] : memref<64x512xf32, #tpu.memory_space<vmem>>, vector<64x128xf32>
    %43 = vector.broadcast %41 : f32 to vector<64x128xf32>
    %44 = arith.mulf %43, %42 : vector<64x128xf32>
    %45 = arith.addf %40, %44 : vector<64x128xf32>
    %c1_15 = arith.constant 1 : index
    %46 = memref.load %arg3[%c1_15] : memref<8xf32, #tpu.memory_space<smem>>
    %47 = vector.broadcast %46 : f32 to vector<64x128xf32>
    %48 = arith.addf %45, %47 : vector<64x128xf32>
    %cst_16 = arith.constant 0.000000e+00 : f32
    %49 = vector.broadcast %cst_16 : f32 to vector<64x128xf32>
    %50 = arith.maximumf %48, %49 : vector<64x128xf32>
    %c1_17 = arith.constant 1 : index
    %51 = memref.load %arg4[%c1_17] : memref<8xf32, #tpu.memory_space<smem>>
    %52 = vector.broadcast %51 : f32 to vector<64x128xf32>
    %53 = arith.mulf %52, %50 : vector<64x128xf32>
    %54 = arith.addf %26, %53 : vector<64x128xf32>
    %c8 = arith.constant 8 : index
    %55 = memref.load %arg2[%c8] : memref<32xf32, #tpu.memory_space<smem>>
    %c0_18 = arith.constant 0 : index
    %c0_19 = arith.constant 0 : index
    %56 = vector.load %arg1[%c0_18, %c0_19] : memref<64x512xf32, #tpu.memory_space<vmem>>, vector<64x128xf32>
    %57 = vector.broadcast %55 : f32 to vector<64x128xf32>
    %58 = arith.mulf %57, %56 : vector<64x128xf32>
    %c9 = arith.constant 9 : index
    %59 = memref.load %arg2[%c9] : memref<32xf32, #tpu.memory_space<smem>>
    %c0_20 = arith.constant 0 : index
    %c128_21 = arith.constant 128 : index
    %60 = vector.load %arg1[%c0_20, %c128_21] : memref<64x512xf32, #tpu.memory_space<vmem>>, vector<64x128xf32>
    %61 = vector.broadcast %59 : f32 to vector<64x128xf32>
    %62 = arith.mulf %61, %60 : vector<64x128xf32>
    %63 = arith.addf %58, %62 : vector<64x128xf32>
    %c10 = arith.constant 10 : index
    %64 = memref.load %arg2[%c10] : memref<32xf32, #tpu.memory_space<smem>>
    %c0_22 = arith.constant 0 : index
    %c256_23 = arith.constant 256 : index
    %65 = vector.load %arg1[%c0_22, %c256_23] : memref<64x512xf32, #tpu.memory_space<vmem>>, vector<64x128xf32>
    %66 = vector.broadcast %64 : f32 to vector<64x128xf32>
    %67 = arith.mulf %66, %65 : vector<64x128xf32>
    %68 = arith.addf %63, %67 : vector<64x128xf32>
    %c11 = arith.constant 11 : index
    %69 = memref.load %arg2[%c11] : memref<32xf32, #tpu.memory_space<smem>>
    %c0_24 = arith.constant 0 : index
    %c384_25 = arith.constant 384 : index
    %70 = vector.load %arg1[%c0_24, %c384_25] : memref<64x512xf32, #tpu.memory_space<vmem>>, vector<64x128xf32>
    %71 = vector.broadcast %69 : f32 to vector<64x128xf32>
    %72 = arith.mulf %71, %70 : vector<64x128xf32>
    %73 = arith.addf %68, %72 : vector<64x128xf32>
    %c2_26 = arith.constant 2 : index
    %74 = memref.load %arg3[%c2_26] : memref<8xf32, #tpu.memory_space<smem>>
    %75 = vector.broadcast %74 : f32 to vector<64x128xf32>
    %76 = arith.addf %73, %75 : vector<64x128xf32>
    %cst_27 = arith.constant 0.000000e+00 : f32
    %77 = vector.broadcast %cst_27 : f32 to vector<64x128xf32>
    %78 = arith.maximumf %76, %77 : vector<64x128xf32>
    %c2_28 = arith.constant 2 : index
    %79 = memref.load %arg4[%c2_28] : memref<8xf32, #tpu.memory_space<smem>>
    %80 = vector.broadcast %79 : f32 to vector<64x128xf32>
    %81 = arith.mulf %80, %78 : vector<64x128xf32>
    %82 = arith.addf %54, %81 : vector<64x128xf32>
    %c12 = arith.constant 12 : index
    %83 = memref.load %arg2[%c12] : memref<32xf32, #tpu.memory_space<smem>>
    %c0_29 = arith.constant 0 : index
    %c0_30 = arith.constant 0 : index
    %84 = vector.load %arg1[%c0_29, %c0_30] : memref<64x512xf32, #tpu.memory_space<vmem>>, vector<64x128xf32>
    %85 = vector.broadcast %83 : f32 to vector<64x128xf32>
    %86 = arith.mulf %85, %84 : vector<64x128xf32>
    %c13 = arith.constant 13 : index
    %87 = memref.load %arg2[%c13] : memref<32xf32, #tpu.memory_space<smem>>
    %c0_31 = arith.constant 0 : index
    %c128_32 = arith.constant 128 : index
    %88 = vector.load %arg1[%c0_31, %c128_32] : memref<64x512xf32, #tpu.memory_space<vmem>>, vector<64x128xf32>
    %89 = vector.broadcast %87 : f32 to vector<64x128xf32>
    %90 = arith.mulf %89, %88 : vector<64x128xf32>
    %91 = arith.addf %86, %90 : vector<64x128xf32>
    %c14 = arith.constant 14 : index
    %92 = memref.load %arg2[%c14] : memref<32xf32, #tpu.memory_space<smem>>
    %c0_33 = arith.constant 0 : index
    %c256_34 = arith.constant 256 : index
    %93 = vector.load %arg1[%c0_33, %c256_34] : memref<64x512xf32, #tpu.memory_space<vmem>>, vector<64x128xf32>
    %94 = vector.broadcast %92 : f32 to vector<64x128xf32>
    %95 = arith.mulf %94, %93 : vector<64x128xf32>
    %96 = arith.addf %91, %95 : vector<64x128xf32>
    %c15 = arith.constant 15 : index
    %97 = memref.load %arg2[%c15] : memref<32xf32, #tpu.memory_space<smem>>
    %c0_35 = arith.constant 0 : index
    %c384_36 = arith.constant 384 : index
    %98 = vector.load %arg1[%c0_35, %c384_36] : memref<64x512xf32, #tpu.memory_space<vmem>>, vector<64x128xf32>
    %99 = vector.broadcast %97 : f32 to vector<64x128xf32>
    %100 = arith.mulf %99, %98 : vector<64x128xf32>
    %101 = arith.addf %96, %100 : vector<64x128xf32>
    %c3_37 = arith.constant 3 : index
    %102 = memref.load %arg3[%c3_37] : memref<8xf32, #tpu.memory_space<smem>>
    %103 = vector.broadcast %102 : f32 to vector<64x128xf32>
    %104 = arith.addf %101, %103 : vector<64x128xf32>
    %cst_38 = arith.constant 0.000000e+00 : f32
    %105 = vector.broadcast %cst_38 : f32 to vector<64x128xf32>
    %106 = arith.maximumf %104, %105 : vector<64x128xf32>
    %c3_39 = arith.constant 3 : index
    %107 = memref.load %arg4[%c3_39] : memref<8xf32, #tpu.memory_space<smem>>
    %108 = vector.broadcast %107 : f32 to vector<64x128xf32>
    %109 = arith.mulf %108, %106 : vector<64x128xf32>
    %110 = arith.addf %82, %109 : vector<64x128xf32>
    %c16 = arith.constant 16 : index
    %111 = memref.load %arg2[%c16] : memref<32xf32, #tpu.memory_space<smem>>
    %c0_40 = arith.constant 0 : index
    %c0_41 = arith.constant 0 : index
    %112 = vector.load %arg1[%c0_40, %c0_41] : memref<64x512xf32, #tpu.memory_space<vmem>>, vector<64x128xf32>
    %113 = vector.broadcast %111 : f32 to vector<64x128xf32>
    %114 = arith.mulf %113, %112 : vector<64x128xf32>
    %c17 = arith.constant 17 : index
    %115 = memref.load %arg2[%c17] : memref<32xf32, #tpu.memory_space<smem>>
    %c0_42 = arith.constant 0 : index
    %c128_43 = arith.constant 128 : index
    %116 = vector.load %arg1[%c0_42, %c128_43] : memref<64x512xf32, #tpu.memory_space<vmem>>, vector<64x128xf32>
    %117 = vector.broadcast %115 : f32 to vector<64x128xf32>
    %118 = arith.mulf %117, %116 : vector<64x128xf32>
    %119 = arith.addf %114, %118 : vector<64x128xf32>
    %c18 = arith.constant 18 : index
    %120 = memref.load %arg2[%c18] : memref<32xf32, #tpu.memory_space<smem>>
    %c0_44 = arith.constant 0 : index
    %c256_45 = arith.constant 256 : index
    %121 = vector.load %arg1[%c0_44, %c256_45] : memref<64x512xf32, #tpu.memory_space<vmem>>, vector<64x128xf32>
    %122 = vector.broadcast %120 : f32 to vector<64x128xf32>
    %123 = arith.mulf %122, %121 : vector<64x128xf32>
    %124 = arith.addf %119, %123 : vector<64x128xf32>
    %c19 = arith.constant 19 : index
    %125 = memref.load %arg2[%c19] : memref<32xf32, #tpu.memory_space<smem>>
    %c0_46 = arith.constant 0 : index
    %c384_47 = arith.constant 384 : index
    %126 = vector.load %arg1[%c0_46, %c384_47] : memref<64x512xf32, #tpu.memory_space<vmem>>, vector<64x128xf32>
    %127 = vector.broadcast %125 : f32 to vector<64x128xf32>
    %128 = arith.mulf %127, %126 : vector<64x128xf32>
    %129 = arith.addf %124, %128 : vector<64x128xf32>
    %c4_48 = arith.constant 4 : index
    %130 = memref.load %arg3[%c4_48] : memref<8xf32, #tpu.memory_space<smem>>
    %131 = vector.broadcast %130 : f32 to vector<64x128xf32>
    %132 = arith.addf %129, %131 : vector<64x128xf32>
    %cst_49 = arith.constant 0.000000e+00 : f32
    %133 = vector.broadcast %cst_49 : f32 to vector<64x128xf32>
    %134 = arith.maximumf %132, %133 : vector<64x128xf32>
    %c4_50 = arith.constant 4 : index
    %135 = memref.load %arg4[%c4_50] : memref<8xf32, #tpu.memory_space<smem>>
    %136 = vector.broadcast %135 : f32 to vector<64x128xf32>
    %137 = arith.mulf %136, %134 : vector<64x128xf32>
    %138 = arith.addf %110, %137 : vector<64x128xf32>
    %c20 = arith.constant 20 : index
    %139 = memref.load %arg2[%c20] : memref<32xf32, #tpu.memory_space<smem>>
    %c0_51 = arith.constant 0 : index
    %c0_52 = arith.constant 0 : index
    %140 = vector.load %arg1[%c0_51, %c0_52] : memref<64x512xf32, #tpu.memory_space<vmem>>, vector<64x128xf32>
    %141 = vector.broadcast %139 : f32 to vector<64x128xf32>
    %142 = arith.mulf %141, %140 : vector<64x128xf32>
    %c21 = arith.constant 21 : index
    %143 = memref.load %arg2[%c21] : memref<32xf32, #tpu.memory_space<smem>>
    %c0_53 = arith.constant 0 : index
    %c128_54 = arith.constant 128 : index
    %144 = vector.load %arg1[%c0_53, %c128_54] : memref<64x512xf32, #tpu.memory_space<vmem>>, vector<64x128xf32>
    %145 = vector.broadcast %143 : f32 to vector<64x128xf32>
    %146 = arith.mulf %145, %144 : vector<64x128xf32>
    %147 = arith.addf %142, %146 : vector<64x128xf32>
    %c22 = arith.constant 22 : index
    %148 = memref.load %arg2[%c22] : memref<32xf32, #tpu.memory_space<smem>>
    %c0_55 = arith.constant 0 : index
    %c256_56 = arith.constant 256 : index
    %149 = vector.load %arg1[%c0_55, %c256_56] : memref<64x512xf32, #tpu.memory_space<vmem>>, vector<64x128xf32>
    %150 = vector.broadcast %148 : f32 to vector<64x128xf32>
    %151 = arith.mulf %150, %149 : vector<64x128xf32>
    %152 = arith.addf %147, %151 : vector<64x128xf32>
    %c23 = arith.constant 23 : index
    %153 = memref.load %arg2[%c23] : memref<32xf32, #tpu.memory_space<smem>>
    %c0_57 = arith.constant 0 : index
    %c384_58 = arith.constant 384 : index
    %154 = vector.load %arg1[%c0_57, %c384_58] : memref<64x512xf32, #tpu.memory_space<vmem>>, vector<64x128xf32>
    %155 = vector.broadcast %153 : f32 to vector<64x128xf32>
    %156 = arith.mulf %155, %154 : vector<64x128xf32>
    %157 = arith.addf %152, %156 : vector<64x128xf32>
    %c5_59 = arith.constant 5 : index
    %158 = memref.load %arg3[%c5_59] : memref<8xf32, #tpu.memory_space<smem>>
    %159 = vector.broadcast %158 : f32 to vector<64x128xf32>
    %160 = arith.addf %157, %159 : vector<64x128xf32>
    %cst_60 = arith.constant 0.000000e+00 : f32
    %161 = vector.broadcast %cst_60 : f32 to vector<64x128xf32>
    %162 = arith.maximumf %160, %161 : vector<64x128xf32>
    %c5_61 = arith.constant 5 : index
    %163 = memref.load %arg4[%c5_61] : memref<8xf32, #tpu.memory_space<smem>>
    %164 = vector.broadcast %163 : f32 to vector<64x128xf32>
    %165 = arith.mulf %164, %162 : vector<64x128xf32>
    %166 = arith.addf %138, %165 : vector<64x128xf32>
    %c24 = arith.constant 24 : index
    %167 = memref.load %arg2[%c24] : memref<32xf32, #tpu.memory_space<smem>>
    %c0_62 = arith.constant 0 : index
    %c0_63 = arith.constant 0 : index
    %168 = vector.load %arg1[%c0_62, %c0_63] : memref<64x512xf32, #tpu.memory_space<vmem>>, vector<64x128xf32>
    %169 = vector.broadcast %167 : f32 to vector<64x128xf32>
    %170 = arith.mulf %169, %168 : vector<64x128xf32>
    %c25 = arith.constant 25 : index
    %171 = memref.load %arg2[%c25] : memref<32xf32, #tpu.memory_space<smem>>
    %c0_64 = arith.constant 0 : index
    %c128_65 = arith.constant 128 : index
    %172 = vector.load %arg1[%c0_64, %c128_65] : memref<64x512xf32, #tpu.memory_space<vmem>>, vector<64x128xf32>
    %173 = vector.broadcast %171 : f32 to vector<64x128xf32>
    %174 = arith.mulf %173, %172 : vector<64x128xf32>
    %175 = arith.addf %170, %174 : vector<64x128xf32>
    %c26 = arith.constant 26 : index
    %176 = memref.load %arg2[%c26] : memref<32xf32, #tpu.memory_space<smem>>
    %c0_66 = arith.constant 0 : index
    %c256_67 = arith.constant 256 : index
    %177 = vector.load %arg1[%c0_66, %c256_67] : memref<64x512xf32, #tpu.memory_space<vmem>>, vector<64x128xf32>
    %178 = vector.broadcast %176 : f32 to vector<64x128xf32>
    %179 = arith.mulf %178, %177 : vector<64x128xf32>
    %180 = arith.addf %175, %179 : vector<64x128xf32>
    %c27 = arith.constant 27 : index
    %181 = memref.load %arg2[%c27] : memref<32xf32, #tpu.memory_space<smem>>
    %c0_68 = arith.constant 0 : index
    %c384_69 = arith.constant 384 : index
    %182 = vector.load %arg1[%c0_68, %c384_69] : memref<64x512xf32, #tpu.memory_space<vmem>>, vector<64x128xf32>
    %183 = vector.broadcast %181 : f32 to vector<64x128xf32>
    %184 = arith.mulf %183, %182 : vector<64x128xf32>
    %185 = arith.addf %180, %184 : vector<64x128xf32>
    %c6_70 = arith.constant 6 : index
    %186 = memref.load %arg3[%c6_70] : memref<8xf32, #tpu.memory_space<smem>>
    %187 = vector.broadcast %186 : f32 to vector<64x128xf32>
    %188 = arith.addf %185, %187 : vector<64x128xf32>
    %cst_71 = arith.constant 0.000000e+00 : f32
    %189 = vector.broadcast %cst_71 : f32 to vector<64x128xf32>
    %190 = arith.maximumf %188, %189 : vector<64x128xf32>
    %c6_72 = arith.constant 6 : index
    %191 = memref.load %arg4[%c6_72] : memref<8xf32, #tpu.memory_space<smem>>
    %192 = vector.broadcast %191 : f32 to vector<64x128xf32>
    %193 = arith.mulf %192, %190 : vector<64x128xf32>
    %194 = arith.addf %166, %193 : vector<64x128xf32>
    %c28 = arith.constant 28 : index
    %195 = memref.load %arg2[%c28] : memref<32xf32, #tpu.memory_space<smem>>
    %c0_73 = arith.constant 0 : index
    %c0_74 = arith.constant 0 : index
    %196 = vector.load %arg1[%c0_73, %c0_74] : memref<64x512xf32, #tpu.memory_space<vmem>>, vector<64x128xf32>
    %197 = vector.broadcast %195 : f32 to vector<64x128xf32>
    %198 = arith.mulf %197, %196 : vector<64x128xf32>
    %c29 = arith.constant 29 : index
    %199 = memref.load %arg2[%c29] : memref<32xf32, #tpu.memory_space<smem>>
    %c0_75 = arith.constant 0 : index
    %c128_76 = arith.constant 128 : index
    %200 = vector.load %arg1[%c0_75, %c128_76] : memref<64x512xf32, #tpu.memory_space<vmem>>, vector<64x128xf32>
    %201 = vector.broadcast %199 : f32 to vector<64x128xf32>
    %202 = arith.mulf %201, %200 : vector<64x128xf32>
    %203 = arith.addf %198, %202 : vector<64x128xf32>
    %c30 = arith.constant 30 : index
    %204 = memref.load %arg2[%c30] : memref<32xf32, #tpu.memory_space<smem>>
    %c0_77 = arith.constant 0 : index
    %c256_78 = arith.constant 256 : index
    %205 = vector.load %arg1[%c0_77, %c256_78] : memref<64x512xf32, #tpu.memory_space<vmem>>, vector<64x128xf32>
    %206 = vector.broadcast %204 : f32 to vector<64x128xf32>
    %207 = arith.mulf %206, %205 : vector<64x128xf32>
    %208 = arith.addf %203, %207 : vector<64x128xf32>
    %c31 = arith.constant 31 : index
    %209 = memref.load %arg2[%c31] : memref<32xf32, #tpu.memory_space<smem>>
    %c0_79 = arith.constant 0 : index
    %c384_80 = arith.constant 384 : index
    %210 = vector.load %arg1[%c0_79, %c384_80] : memref<64x512xf32, #tpu.memory_space<vmem>>, vector<64x128xf32>
    %211 = vector.broadcast %209 : f32 to vector<64x128xf32>
    %212 = arith.mulf %211, %210 : vector<64x128xf32>
    %213 = arith.addf %208, %212 : vector<64x128xf32>
    %c7_81 = arith.constant 7 : index
    %214 = memref.load %arg3[%c7_81] : memref<8xf32, #tpu.memory_space<smem>>
    %215 = vector.broadcast %214 : f32 to vector<64x128xf32>
    %216 = arith.addf %213, %215 : vector<64x128xf32>
    %cst_82 = arith.constant 0.000000e+00 : f32
    %217 = vector.broadcast %cst_82 : f32 to vector<64x128xf32>
    %218 = arith.maximumf %216, %217 : vector<64x128xf32>
    %c7_83 = arith.constant 7 : index
    %219 = memref.load %arg4[%c7_83] : memref<8xf32, #tpu.memory_space<smem>>
    %220 = vector.broadcast %219 : f32 to vector<64x128xf32>
    %221 = arith.mulf %220, %218 : vector<64x128xf32>
    %222 = arith.addf %194, %221 : vector<64x128xf32>
    %cst_84 = arith.constant dense<0xFF800000> : vector<64xf32>
    %223 = vector.multi_reduction <maximumf>, %222, %cst_84 [1] : vector<64x128xf32> to vector<64xf32>
    %224 = vector.shape_cast %223 : vector<64xf32> to vector<64x1xf32>
    %225 = vector.broadcast %224 : vector<64x1xf32> to vector<64x128xf32>
    %226 = arith.subf %222, %225 : vector<64x128xf32>
    %227 = math.exp %226 : vector<64x128xf32>
    %cst_85 = arith.constant dense<0.000000e+00> : vector<64xf32>
    %228 = vector.multi_reduction <add>, %227, %cst_85 [1] : vector<64x128xf32> to vector<64xf32>
    %229 = vector.shape_cast %228 : vector<64xf32> to vector<64x1xf32>
    %230 = tpu.reciprocal %229 : vector<64x1xf32> -> vector<64x1xf32>
    %231 = vector.broadcast %230 : vector<64x1xf32> to vector<64x128xf32>
    %232 = arith.mulf %227, %231 : vector<64x128xf32>
    %c0_86 = arith.constant 0 : index
    %c0_87 = arith.constant 0 : index
    %233 = vector.load %arg5[%c0_86, %c0_87] : memref<64x128xf32, #tpu.memory_space<vmem>>, vector<64x128xf32>
    tpu.vector_store %arg5[%c0_86, %c0_87], %232 {strides = array<i32>} : memref<64x128xf32, #tpu.memory_space<vmem>>, vector<64x128xf32>,
    return
  }
  func.func @transform_0(%arg0: i32) -> (i32, i32) {
    %c0_i32 = arith.constant 0 : i32
    %c0_i32_0 = arith.constant 0 : i32
    return %arg0, %c0_i32 : i32, i32
  }
  func.func @transform_1(%arg0: i32) -> i32 {
    %c0_i32 = arith.constant 0 : i32
    %c0_i32_0 = arith.constant 0 : i32
    return %c0_i32 : i32
  }
  func.func @transform_2(%arg0: i32) -> i32 {
    %c0_i32 = arith.constant 0 : i32
    %c0_i32_0 = arith.constant 0 : i32
    return %c0_i32 : i32
  }
  func.func @transform_3(%arg0: i32) -> i32 {
    %c0_i32 = arith.constant 0 : i32
    %c0_i32_0 = arith.constant 0 : i32
    return %c0_i32 : i32
  }
  func.func @transform_4(%arg0: i32) -> (i32, i32) {
    %c0_i32 = arith.constant 0 : i32
    %c0_i32_0 = arith.constant 0 : i32
    return %arg0, %c0_i32 : i32, i32
  }
}

</mosaic_0001>

<bundles_post_ra>
// kernel: tpu_custom_call.1
= control target key start
LH: loop header
LB: loop body
LE: loop exit
PB: predicated region body
PF: predicated region fallthrough
CT: control target
= control target key end

     0   :  { %9 = vsyncpa [#allocation3], 0  ;;  %s2760_s0 = inlined_call_operand.hbm [shape: f32[128,512], index: 0, kind: input, shape index: {}]   ;;  %s2761_s1 = inlined_call_operand.vmem [shape: f32[32], index: 1, kind: input, shape index: {}]   ;;  %s2762_s2 = inlined_call_operand.vmem [shape: f32[8], index: 2, kind: input, shape index: {}]   ;;  %s2763_s3 = inlined_call_operand.vmem [shape: f32[8], index: 3, kind: input, shape index: {}]   ;;  %s2764_s4 = inlined_call_operand.hbm [shape: f32[128,128], index: 4, kind: output, shape index: {}]  }
   0x1   :  { %11 = vsyncpa [#allocation3 + $0x1], 0 }
   0x2   :  { %12 = vsyncpa [#allocation5], 0 }
   0x3   :  { %13 = vsyncpa [#allocation8], 0 }
   0x4   :  { %14 = vsyncpa [#allocation4], 0 }
   0x5   :  { %16 = vsyncpa [#allocation4 + $0x1], 0  ;;  %s1643_s15 = smov 0   ;;  %s1645_s16 = smov 0  }
   0x6   :  { %s1647_s17 = smov 0   ;;  %s1649_s18 = smov 0  }
   0x7 LB: > { %s1664_s19 = sadd.s32 4294967295, %s1607_s18   ;;  %s1280_s20 = sadd.s32 4294967294, %s1607_s18   ;;  %s1607_s18 = sphi %s1649_s18, %s2981_s18   ;;  %s1603_s17 = sphi %s1647_s17, %s2980_s17   ;;  %s1599_s16 = sphi %s1645_s16, %s2979_s16   ;;  %s1595_s15 = sphi %s1643_s15, %s2978_s15  }
   0x8   : > { %p42_p0 = scmp.ne.s32.totalorder %s1599_s16, %s1595_s15  ;;  %p2765_p1 = scmp.eq.s32.totalorder %s1664_s19, 0 }
   0x9   : > { %p135_p3 = scmp.eq.s32.totalorder %s1280_s20, 1  ;;  %p1281_p5 = scmp.ge.s32.totalorder %s1607_s18, 1 }
   0xa   : > { %p1673_p4 = por %p2765_p1, %p42_p0  ;;  %p142_p7 = scmp.lt.s32.totalorder %s1607_s18, 3 }
   0xb   : > { %p1678_p6 = por %p135_p3, %p42_p0  ;;  %s166_s25 = sshll.u32 %s2762_s2, 4  ;;  %s167_s25 = int_to_ptr.vmem [resolvable:$true] %s166_s25 }
   0xc   : > { %s2849_s21 = scalar_select %p1673_p4, 1, 0 }
   0xd   : > { %s2850_s22 = scalar_select %p1678_p6, 1, 0 }
   0xe   : > { %p1686_p8 = pnand %p1281_p5, %p142_p7  ;;  %s155_s29 = sshll.u32 %s2761_s1, 4  ;;  %s156_s29 = int_to_ptr.vmem [resolvable:$true] %s155_s29 }
   0xf   : > { %s177_s7 = sshll.u32 %s2763_s3, 4  ;;  %s1462_s8 = scalar_lea.vmem %s167_s25, 16  ;;  %s1705_s7 = int_to_ptr.vmem [resolvable:$true] %s177_s7 }
  0x10   : > { %s2851_s26 = scalar_select %p1686_p8, 1, 0 }
  0x11   : > { %p1365_p10 = pneg %p1686_p8  ;;  %p1463_p12 = scmp.ne.s32.totalorder %s167_s25, %s1462_s8 }
  0x12   : > { %p1470_p5 = scmp.lt.s32.totalorder %s167_s25, %s167_s25  ;;  %p1471_p7 = scmp.lt.s32.totalorder %s1462_s8, %s1462_s8 }
  0x13   : > { %p1698_p11 = pnand %p1365_p10, %p2765_p1 }
  0x14   : > { %p1472_p10 = por %p1471_p7, %p1470_p5 }
  0x15   : > { %p1464_p13 = pneg %p1698_p11 }
  0x17   : > { %p1465_p0 = pnand %p1464_p13, %p1463_p12 }
  0x19   : > { %p1466_p3 = pneg %p1465_p0 }
  0x1b   : > { %p1473_p9 = pnand %p1472_p10, %p1466_p3 }
  0x1d   : > { %1476 = shalt.err (!%p1473_p9)
}
  0x1e   : > { %s1609_s9 = smov [#allocation7]   ;;  %s1477_s10 = scalar_lea.vmem %s156_s29, 16 }
  0x1f   : > { %1371 = dma.vmem_to_smem (!%p1698_p11), %s167_s25, 16, %s1609_s9, [#allocation8]  }
  0x20   : > { %p1478_p1 = scmp.ne.s32.totalorder %s156_s29, %s1477_s10  ;;  %p1485_p4 = scmp.lt.s32.totalorder %s156_s29, %s156_s29 }
  0x21   : > { %p1486_p8 = scmp.lt.s32.totalorder %s1477_s10, %s1477_s10 }
  0x22   : > { %p1480_p2 = pnand %p1478_p1, %p1464_p13 }
  0x23   : > { %p1487_p12 = por %p1486_p8, %p1485_p4 }
  0x24   : > { %p1481_p6 = pneg %p1480_p2 }
  0x26   : > { %p1488_p0 = pnand %p1487_p12, %p1481_p6 }
  0x28   : > { %1491 = shalt.err (!%p1488_p0)
}
  0x29   : > { %s1610_s11 = smov [#allocation6]   ;;  %s1492_s12 = scalar_lea.vmem %s1705_s7, 16 }
  0x2a   : > { %1368 = dma.vmem_to_smem (!%p1698_p11), %s156_s29, 16, %s1610_s11, [#allocation5]  }
  0x2b   : > { %p1493_p9 = scmp.ne.s32.totalorder %s1705_s7, %s1492_s12  ;;  %p1500_p2 = scmp.lt.s32.totalorder %s1705_s7, %s1705_s7 }
  0x2c   : > { %p1501_p5 = scmp.lt.s32.totalorder %s1492_s12, %s1492_s12 }
  0x2d   : > { %p1495_p3 = pnand %p1493_p9, %p1464_p13 }
  0x2e   : > { %p1502_p4 = por %p1501_p5, %p1500_p2 }
  0x2f   : > { %p1496_p1 = pneg %p1495_p3 }
  0x31   : > { %p1503_p6 = pnand %p1502_p4, %p1496_p1 }
  0x33   : > { %1506 = shalt.err (!%p1503_p6)
}
  0x34   : > { %s1611_s13 = smov [#allocation9]   ;;  %s1730_s14 = sadd.s32 1, %s1607_s18  }
  0x35   : > { %1374 = dma.vmem_to_smem (!%p1698_p11), %s1705_s7, 16, %s1611_s13, [#allocation8]  }
  0x36   : > { %s26_s20 = ssub.s32 %s1607_s18, %s1730_s14  ;;  %s29_s23 = sadd.s32 1, %s1603_s17 }
  0x37   : > { %p27_p8 = scmp.eq.s32.totalorder %s26_s20, 0  ;;  %p36_p13 = scmp.ne.s32.totalorder %s1603_s17, %s1599_s16 }
  0x38   : > { %p37_p7 = scmp.eq.s32.totalorder %s1607_s18, 0  ;;  %p1386_p10 = scmp.lt.s32.totalorder %s1607_s18, 2 }
  0x39   : > { %s1740_s24 = scalar_select %p27_p8, %s1603_s17, %s29_s23  }
  0x3a   : > { %p38_p12 = por %p37_p7, %p36_p13  ;;  %p2853_p0 = scmp.eq.s32.totalorder %s1664_s19, 1 }
  0x3b   : > { %s188_s27 = sand.u32 1, %s1603_s17   ;;  %s1347_s28 = sshll.u32 %s1607_s18, 12 }
  0x3c   : > { %p1744_p9 = por %p2853_p0, %p36_p13  ;;  %s1286_s29 = sshll.u32 %s188_s27, 8 }
  0x3d   : > { %s1753_s6 = scalar_lea.hbm %s2760_s0, %s1347_s28  ;;  %s192_s7 = scalar_lea.vmem [#allocation2], %s1286_s29 }
  0x3e   : > { %s2854_s25 = scalar_select %p1744_p9, 1, 0 }
  0x3f   : > { %s200_s8 = sshll.u32 %s192_s7, 4  ;;  %p1755_p11 = pnand %p1386_p10, %p38_p12  ;;  %s1759_s8 = int_to_ptr.vmem [resolvable:$true] %s200_s8 }
  0x40   : > { %s1761_s10 = scalar_lea.sflag [#allocation3], %s188_s27  ;;  %s1507_s11 = scalar_lea.hbm %s1753_s6, 4096 }
  0x41   : > { %p1508_p3 = scmp.ne.s32.totalorder %s1753_s6, %s1507_s11  ;;  %p1509_p1 = pneg %p1755_p11 }
  0x42   : > { %s1512_s20 = scalar_lea.hbm %s2760_s0, 8192  ;;  %p1513_p4 = scmp.lt.s32.totalorder %s1753_s6, %s2760_s0 }
  0x43   : > { %p1510_p2 = pnand %p1509_p1, %p1508_p3  ;;  %p1514_p6 = scmp.lt.s32.totalorder %s1512_s20, %s1507_s11 }
  0x45   : > { %p1511_p5 = pneg %p1510_p2  ;;  %p1515_p8 = por %p1514_p6, %p1513_p4 }
  0x47   : > { %p1516_p13 = pnand %p1515_p8, %p1511_p5 }
  0x49   : > { %1519 = shalt.err (!%p1516_p13)
}
  0x4a   : > { %s1520_s27 = scalar_lea.vmem %s1759_s8, 4096  ;;  %s1612_s29 = smov [#allocation2]  }
  0x4b   : > { %p1521_p7 = scmp.ne.s32.totalorder %s1759_s8, %s1520_s27  ;;  %s1525_s30 = sshll.u32 %s1612_s29, 4  ;;  %s1526_s30 = int_to_ptr.vmem [resolvable:$false] %s1525_s30 }
  0x4c   : > { %s1527_s5 = scalar_lea.vmem %s1526_s30, 8192  ;;  %p1528_p0 = scmp.lt.s32.totalorder %s1759_s8, %s1526_s30 }
  0x4d   : > { %p1523_p10 = pnand %p1521_p7, %p1509_p1  ;;  %p1529_p3 = scmp.lt.s32.totalorder %s1527_s5, %s1520_s27 }
  0x4f   : > { %p1524_p12 = pneg %p1523_p10  ;;  %p1530_p2 = por %p1529_p3, %p1528_p0 }
  0x51   : > { %p1531_p9 = pnand %p1530_p2, %p1524_p12 }
  0x53   : > { %1534 = shalt.err (!%p1531_p9)
}
  0x54   : > { %s1613_s7 = smov 512   ;;  %s1614_s11 = smov 32  }
  0x55   : > { %1378 = dma.hbm_to_vmem [thread:$0]  (!%p1755_p11), %s1753_s6, 4096, %s1759_s8, %s1761_s10, %s1613_s7, %s1613_s7, %s1614_s11  }
  0x56   : > { %p2856_p1 = scmp.ne.s32.totalorder %s2851_s26, 0 }
  0x58   : > { %212 = sbr.rel (%p2856_p1) target bundleno = 633 (0x279), region = 36 }
  0x5d   : > { %s1785_s12 = sand.u32 1, %s1599_s16   ;;  %p2857_p9 = scmp.ne.s32.totalorder %s2849_s21, 0 }
  0x5e   : > { %s1291_s13 = sshll.u32 %s1785_s12, 8  ;;  %s215_s20 = scalar_lea.sflag [#allocation3], %s1785_s12 }
  0x5f   : > { %s1789_s23 = scalar_lea.vmem [#allocation2], %s1291_s13 }
  0x60   : > { %1578 = dma.done.wait (%p2857_p9), %s215_s20, 4096  }
  0x61   : > { %1580 = vsyncadd (%p2857_p9), %s215_s20, 4294963200  ;;  %p2858_p11 = scmp.eq.s32.totalorder %s1664_s19, 0 }
  0x63   : > { %1582 = dma.done.wait (%p2858_p11), [#allocation5], 16   ;;  %p2859_p5 = pmov %p2858_p11 }
  0x65   : > { %1584 = vsyncadd (%p2859_p5), [#allocation5], 4294967280  ;;  %p2860_p4 = pmov %p2859_p5 }
  0x67   : > { %1586 = dma.done.wait (%p2860_p4), [#allocation8], 32   ;;  %p2861_p6 = pmov %p2860_p4 }
  0x69   : > { %1588 = vsyncadd (%p2861_p6), [#allocation8], 4294967264 }
  0x6a   : > { %235 = sfence }
  0x6b   : > { %s258_s26 = sld [smem:[#allocation6]]  ;;  %v1804_v0 = vld [vmem:[%s1789_s23] sm:$0xff]  ;;  %v1815_v3 = vld [vmem:[%s1789_s23 + $0x8] sm:$0xff]  ;;  %v1828_v7 = vld [vmem:[%s1789_s23 + $0x10] sm:$0xff]  ;;  %p2975_p13 = scmp.ne.s32.totalorder %s2854_s25, 0 }
  0x6c   : > { %s1296_s21 = sld [smem:[#allocation6 + $0x1]]  ;;  %v1809_v1 = vld [vmem:[%s1789_s23 + $0x40] sm:$0xff]  ;;  %v1820_v4 = vld [vmem:[%s1789_s23 + $0x48] sm:$0xff]  ;;  %v1833_v8 = vld [vmem:[%s1789_s23 + $0x50] sm:$0xff] }
  0x6d   : > { %s1297_s6 = sld [smem:[#allocation6 + $0x2]]  ;;  %v1812_v2 = vld [vmem:[%s1789_s23 + $0x20] sm:$0xff]  ;;  %v1823_v5 = vld [vmem:[%s1789_s23 + $0x28] sm:$0xff]  ;;  %v1836_v9 = vld [vmem:[%s1789_s23 + $0x30] sm:$0xff] }
  0x6e   : > { %s1298_s8 = sld [smem:[#allocation6 + $0x3]]  ;;  %v1843_v12 = vld [vmem:[%s1789_s23 + $0x18] sm:$0xff]  ;;  %v1876_v25 = vld [vmem:[%s1789_s23 + $0x60] sm:$0xff] }
  0x6f   : > { %s1806_s9 = sld [smem:[#allocation7]]  ;;  %v1860_v18 = vld [vmem:[%s1789_s23 + $0x58] sm:$0xff]  ;;  %2866 = vst [vmem:[#allocation19_spill] sm:$0xff] %v1876_v25 }
  0x70   : > { %s1817_s10 = sld [smem:[#allocation9]]  ;;  %v1865_v20 = vld [vmem:[%s1789_s23 + $0x38] sm:$0xff] }
  0x71   : > { %v1825_v6 = vstv %s258_s26  ;;  %s1830_s28 = sld [smem:[#allocation6 + $0x4]] }
  0x72   : > { %2862 = vst [vmem:[#allocation15_spill] sm:$0xff] %v1825_v6  ;;  %v268_v10 = vmul.f32 %v1825_v6, %v1804_v0  ;;  %v1840_v11 = vstv %s1296_s21  ;;  %s1845_s27 = sld [smem:[#allocation6 + $0x5]]  ;;  %v270_v13 = vmul.f32 %v1825_v6, %v1809_v1  ;;  %v269_v14 = vmul.f32 %v1825_v6, %v1812_v2 }
  0x73   : > { %2863 = vst [vmem:[#allocation16_spill] sm:$0xff] %v1840_v11  ;;  %v286_v15 = vmul.f32 %v1840_v11, %v1815_v3  ;;  %v1853_v16 = vstv %s1297_s6  ;;  %s1855_s29 = sld [smem:[#allocation6 + $0x6]]  ;;  %v288_v17 = vmul.f32 %v1840_v11, %v1820_v4  ;;  %v287_v19 = vmul.f32 %v1840_v11, %v1823_v5 }
  0x74   : > { %2864 = vst [vmem:[#allocation17_spill] sm:$0xff] %v1853_v16  ;;  %v312_v21 = vmul.f32 %v1853_v16, %v1828_v7  ;;  %v1869_v22 = vstv %s1298_s8  ;;  %s1302_s30 = sld [smem:[#allocation6 + $0x7]]  ;;  %v314_v23 = vmul.f32 %v1853_v16, %v1833_v8  ;;  %v313_v24 = vmul.f32 %v1853_v16, %v1836_v9 }
  0x75   : > { %2865 = vst [vmem:[#allocation18_spill] sm:$0xff] %v1869_v22  ;;  %v294_v26 = vadd.f32 %v286_v15, %v268_v10  ;;  %v338_v27 = vmul.f32 %v1869_v22, %v1843_v12  ;;  %v1881_v28 = vstv %s1806_s9  ;;  %s1303_s5 = sld [smem:[#allocation7 + $0x1]]  ;;  %v296_v29 = vadd.f32 %v288_v17, %v270_v13 }
  0x76   : > { %v1884_v30 = vstv %s1817_s10  ;;  %s1304_s7 = sld [smem:[#allocation9 + $0x1]]  ;;  %v340_v31 = vmul.f32 %v1869_v22, %v1860_v18  ;;  %v295_v32 = vadd.f32 %v287_v19, %v269_v14  ;;  %v339_v33 = vmul.f32 %v1869_v22, %v1865_v20 }
  0x77   : > { %2867 = vst [vmem:[#allocation20_spill] sm:$0xff] %v1884_v30  ;;  %v320_v34 = vadd.f32 %v312_v21, %v294_v26  ;;  %v1891_v35 = vstv %s1830_s28  ;;  %s1305_s11 = sld [smem:[#allocation6 + $0x8]]  ;;  %v322_v36 = vadd.f32 %v314_v23, %v296_v29  ;;  %v1895_v37 = vmul.f32 %v1825_v6, %v1876_v25 }
  0x78   : > { %v384_v38 = vmul.f32 %v1891_v35, %v1804_v0  ;;  %v1900_v39 = vstv %s1845_s27  ;;  %s1306_s13 = sld [smem:[#allocation6 + $0x9]]  ;;  %v386_v40 = vmul.f32 %v1891_v35, %v1809_v1  ;;  %v321_v41 = vadd.f32 %v313_v24, %v295_v32 }
  0x79   : > { %2868 = vst [vmem:[#allocation21_spill] sm:$0xff] %v1895_v37  ;;  %v346_v42 = vadd.f32 %v338_v27, %v320_v34  ;;  %v394_v43 = vmul.f32 %v1900_v39, %v1815_v3  ;;  %v1907_v44 = vstv %s1855_s29  ;;  %s1307_s20 = sld [smem:[#allocation6 + $0xa]]  ;;  %v348_v45 = vadd.f32 %v340_v31, %v322_v36 }
  0x7a   : > { %v412_v46 = vmul.f32 %v1907_v44, %v1828_v7  ;;  %v1911_v47 = vstv %s1302_s30  ;;  %s1308_s26 = sld [smem:[#allocation6 + $0xb]]  ;;  %v396_v48 = vmul.f32 %v1900_v39, %v1820_v4  ;;  %v414_v49 = vmul.f32 %v1907_v44, %v1833_v8 }
  0x7b   : > { %v356_v50 = vadd.f32 %v1881_v28, %v346_v42  ;;  %v402_v51 = vadd.f32 %v394_v43, %v384_v38  ;;  %v430_v52 = vmul.f32 %v1911_v47, %v1843_v12  ;;  %v1920_v53 = vstv %s1303_s5  ;;  %s1309_s21 = sld [smem:[#allocation7 + $0x2]] }
  0x7c   : > { %2869 = vst [vmem:[#allocation22_spill] sm:$0xff] %v1920_v53  ;;  %v1922_v54 = vstv %s1304_s7  ;;  %s1310_s6 = sld [smem:[#allocation9 + $0x2]]  ;;  %v358_v55 = vadd.f32 %v1881_v28, %v348_v45  ;;  %v404_v56 = vadd.f32 %v396_v48, %v386_v40  ;;  %v432_v57 = vmul.f32 %v1911_v47, %v1860_v18 }
  0x7d   : > { %2870 = vst [vmem:[#allocation23_spill] sm:$0xff] %v1922_v54  ;;  %v364_v58 = vmax.f32 %v356_v50, 0.0  ;;  %v420_v59 = vadd.f32 %v412_v46, %v402_v51  ;;  %v1927_v60 = vstv %s1305_s11  ;;  %s1311_s8 = sld [smem:[#allocation6 + $0xc]]  ;;  %v1929_v61 = vadd.f32 %v339_v33, %v321_v41 }
  0x7e   : > { %v484_v62 = vmul.f32 %v1927_v60, %v1804_v0  ;;  %v1933_v63 = vstv %s1306_s13  ;;  %s1312_s9 = sld [smem:[#allocation6 + $0xd]]  ;;  %v366_v10 = vmax.f32 %v358_v55, 0.0  ;;  %v422_v13 = vadd.f32 %v414_v49, %v404_v56 }
  0x7f   : > { %v374_v14 = vmul.f32 %v1884_v30, %v364_v58  ;;  %v438_v15 = vadd.f32 %v430_v52, %v420_v59  ;;  %v494_v17 = vmul.f32 %v1933_v63, %v1815_v3  ;;  %v1938_v19 = vstv %s1307_s20  ;;  %s1313_s10 = sld [smem:[#allocation6 + $0xe]] }
  0x80   : > { %v512_v21 = vmul.f32 %v1938_v19, %v1828_v7  ;;  %v1942_v23 = vstv %s1308_s26  ;;  %s1314_s28 = sld [smem:[#allocation6 + $0xf]]  ;;  %v376_v24 = vmul.f32 %v1884_v30, %v366_v10  ;;  %v440_v26 = vadd.f32 %v432_v57, %v422_v13 }
  0x81   : > { %v448_v27 = vadd.f32 %v1920_v53, %v438_v15  ;;  %v502_v29 = vadd.f32 %v494_v17, %v484_v62  ;;  %v530_v31 = vmul.f32 %v1942_v23, %v1843_v12  ;;  %v1948_v32 = vstv %s1309_s21  ;;  %s1950_s27 = sld [smem:[#allocation7 + $0x3]] }
  0x82   : > { %2871 = vst [vmem:[#allocation24_spill] sm:$0xff] %v1948_v32  ;;  %v1952_v33 = vstv %s1310_s6  ;;  %s1954_s29 = sld [smem:[#allocation9 + $0x3]]  ;;  %v450_v34 = vadd.f32 %v1920_v53, %v440_v26  ;;  %v486_v36 = vmul.f32 %v1927_v60, %v1809_v1  ;;  %v496_v38 = vmul.f32 %v1933_v63, %v1820_v4 }
  0x83   : > { %2872 = vst [vmem:[#allocation25_spill] sm:$0xff] %v1952_v33  ;;  %v456_v40 = vmax.f32 %v448_v27, 0.0  ;;  %v520_v41 = vadd.f32 %v512_v21, %v502_v29  ;;  %v1961_v42 = vstv %s1311_s8  ;;  %s1317_s30 = sld [smem:[#allocation6 + $0x10]]  ;;  %v514_v43 = vmul.f32 %v1938_v19, %v1833_v8 }
  0x84   : > { %v584_v45 = vmul.f32 %v1961_v42, %v1804_v0  ;;  %v1967_v46 = vstv %s1312_s9  ;;  %s1318_s5 = sld [smem:[#allocation6 + $0x11]]  ;;  %v458_v48 = vmax.f32 %v450_v34, 0.0  ;;  %v504_v49 = vadd.f32 %v496_v38, %v486_v36 }
  0x85   : > { %v466_v50 = vmul.f32 %v1922_v54, %v456_v40  ;;  %v538_v51 = vadd.f32 %v530_v31, %v520_v41  ;;  %v594_v52 = vmul.f32 %v1967_v46, %v1815_v3  ;;  %v1972_v55 = vstv %s1313_s10  ;;  %s1319_s7 = sld [smem:[#allocation6 + $0x12]] }
  0x86   : > { %v612_v56 = vmul.f32 %v1972_v55, %v1828_v7  ;;  %v1976_v57 = vstv %s1314_s28  ;;  %s1320_s11 = sld [smem:[#allocation6 + $0x13]]  ;;  %v468_v58 = vmul.f32 %v1922_v54, %v458_v48  ;;  %v522_v59 = vadd.f32 %v514_v43, %v504_v49 }
  0x87   : > { %2873 = vst [vmem:[#allocation26_spill] sm:$0xff] %v1976_v57  ;;  %v474_v62 = vadd.f32 %v466_v50, %v374_v14  ;;  %v548_v10 = vadd.f32 %v1948_v32, %v538_v51  ;;  %v602_v13 = vadd.f32 %v594_v52, %v584_v45  ;;  %v630_v15 = vmul.f32 %v1976_v57, %v1843_v12  ;;  %s1982_s13 = sld [smem:[#allocation7 + $0x4]] }
  0x88   : > { %v1985_v17 = vstv %s1950_s27  ;;  %v1988_v21 = vstv %s1954_s29  ;;  %s1322_s20 = sld [smem:[#allocation9 + $0x4]]  ;;  %v476_v26 = vadd.f32 %v468_v58, %v376_v24  ;;  %v532_v27 = vmul.f32 %v1942_v23, %v1860_v18 }
  0x89   : > { %2874 = vst [vmem:[#allocation27_spill] sm:$0xff] %v1985_v17  ;;  %2875 = vst [vmem:[#allocation28_spill] sm:$0xff] %v1988_v21  ;;  %v556_v29 = vmax.f32 %v548_v10, 0.0  ;;  %v620_v31 = vadd.f32 %v612_v56, %v602_v13  ;;  %v1992_v14 = vstv %s1317_s30  ;;  %s1323_s26 = sld [smem:[#allocation6 + $0x14]]  ;;  %v586_v34 = vmul.f32 %v1961_v42, %v1809_v1 }
  0x8a   : > { %2876 = vst [vmem:[#allocation29_spill] sm:$0xff] %v1992_v14  ;;  %v684_v36 = vmul.f32 %v1992_v14, %v1804_v0  ;;  %v1998_v38 = vstv %s1318_s5  ;;  %s1324_s21 = sld [smem:[#allocation6 + $0x15]]  ;;  %v540_v40 = vadd.f32 %v532_v27, %v522_v59  ;;  %v596_v24 = vmul.f32 %v1967_v46, %v1820_v4 }
  0x8b   : > { %2877 = vst [vmem:[#allocation30_spill] sm:$0xff] %v1998_v38  ;;  %v566_v41 = vmul.f32 %v1952_v33, %v556_v29  ;;  %v638_v43 = vadd.f32 %v630_v15, %v620_v31  ;;  %v694_v45 = vmul.f32 %v1998_v38, %v1815_v3  ;;  %v2005_v48 = vstv %s1319_s7  ;;  %s1325_s6 = sld [smem:[#allocation6 + $0x16]] }
  0x8c   : > { %2878 = vst [vmem:[#allocation31_spill] sm:$0xff] %v2005_v48  ;;  %v712_v49 = vmul.f32 %v2005_v48, %v1828_v7  ;;  %v2009_v50 = vstv %s1320_s11  ;;  %s1326_s8 = sld [smem:[#allocation6 + $0x17]]  ;;  %v550_v51 = vadd.f32 %v1948_v32, %v540_v40  ;;  %v604_v52 = vadd.f32 %v596_v24, %v586_v34 }
  0x8d   : > { %2879 = vst [vmem:[#allocation32_spill] sm:$0xff] %v2009_v50  ;;  %v574_v56 = vadd.f32 %v566_v41, %v474_v62  ;;  %v648_v58 = vadd.f32 %v1985_v17, %v638_v43  ;;  %v702_v59 = vadd.f32 %v694_v45, %v684_v36  ;;  %v730_v10 = vmul.f32 %v2009_v50, %v1843_v12  ;;  %s2015_s9 = sld [smem:[#allocation7 + $0x5]] }
  0x8e   : > { %v2018_v13 = vstv %s1982_s13  ;;  %v2020_v15 = vstv %s1322_s20  ;;  %s1328_s10 = sld [smem:[#allocation9 + $0x5]]  ;;  %v558_v27 = vmax.f32 %v550_v51, 0.0  ;;  %v614_v29 = vmul.f32 %v1972_v55, %v1833_v8 }
  0x8f   : > { %2880 = vst [vmem:[#allocation33_spill] sm:$0xff] %v2018_v13  ;;  %v656_v31 = vmax.f32 %v648_v58, 0.0  ;;  %v720_v34 = vadd.f32 %v712_v49, %v702_v59  ;;  %v2024_v62 = vstv %s1323_s26  ;;  %s1329_s28 = sld [smem:[#allocation6 + $0x18]]  ;;  %v632_v36 = vmul.f32 %v1976_v57, %v1860_v18 }
  0x90   : > { %2881 = vst [vmem:[#allocation34_spill] sm:$0xff] %v2024_v62  ;;  %v784_v40 = vmul.f32 %v2024_v62, %v1804_v0  ;;  %v2030_v24 = vstv %s1324_s21  ;;  %s1330_s27 = sld [smem:[#allocation6 + $0x19]]  ;;  %v568_v41 = vmul.f32 %v1952_v33, %v558_v27  ;;  %v622_v43 = vadd.f32 %v614_v29, %v604_v52 }
  0x91   : > { %2882 = vst [vmem:[#allocation35_spill] sm:$0xff] %v2030_v24  ;;  %v666_v45 = vmul.f32 %v1988_v21, %v656_v31  ;;  %v738_v51 = vadd.f32 %v730_v10, %v720_v34  ;;  %v794_v49 = vmul.f32 %v2030_v24, %v1815_v3  ;;  %v2036_v58 = vstv %s1325_s6  ;;  %s1331_s29 = sld [smem:[#allocation6 + $0x1a]] }
  0x92   : > { %2883 = vst [vmem:[#allocation36_spill] sm:$0xff] %v2036_v58  ;;  %v812_v59 = vmul.f32 %v2036_v58, %v1828_v7  ;;  %v2040_v6 = vstv %s1326_s8  ;;  %s1332_s30 = sld [smem:[#allocation6 + $0x1b]]  ;;  %v576_v25 = vadd.f32 %v568_v41, %v476_v26  ;;  %v640_v37 = vadd.f32 %v632_v36, %v622_v43 }
  0x93   : > { %2884 = vst [vmem:[#allocation37_spill] sm:$0xff] %v2040_v6  ;;  %v674_v27 = vadd.f32 %v666_v45, %v574_v56  ;;  %v748_v52 = vadd.f32 %v2018_v13, %v738_v51  ;;  %v802_v29 = vadd.f32 %v794_v49, %v784_v40  ;;  %v830_v10 = vmul.f32 %v2040_v6, %v1843_v12  ;;  %s2045_s5 = sld [smem:[#allocation7 + $0x6]] }
  0x94   : > { %v2048_v31 = vstv %s2015_s9  ;;  %v2050_v34 = vstv %s1328_s10  ;;  %s1334_s7 = sld [smem:[#allocation9 + $0x6]]  ;;  %v650_v22 = vadd.f32 %v1985_v17, %v640_v37  ;;  %v686_v26 = vmul.f32 %v1992_v14, %v1809_v1  ;;  %s1348_s9 = sshll.u32 %s1664_s19, 10 }
  0x95   : > { %2885 = vst [vmem:[#allocation38_spill] sm:$0xff] %v2048_v31  ;;  %v756_v36 = vmax.f32 %v748_v52, 0.0  ;;  %v820_v56 = vadd.f32 %v812_v59, %v802_v29  ;;  %v2055_v41 = vstv %s1329_s28  ;;  %s1335_s11 = sld [smem:[#allocation6 + $0x1c]]  ;;  %v696_v40 = vmul.f32 %v1998_v38, %v1820_v4  ;;  %s1615_s19 = smov [#allocation10]  }
  0x96   : > { %2886 = vst [vmem:[#allocation39_spill] sm:$0xff] %v2055_v41  ;;  %v884_v43 = vmul.f32 %v2055_v41, %v1804_v0  ;;  %v2061_v45 = vstv %s1330_s27  ;;  %s1336_s13 = sld [smem:[#allocation6 + $0x1d]]  ;;  %v658_v51 = vmax.f32 %v650_v22, 0.0  ;;  %v714_v37 = vmul.f32 %v2005_v48, %v1833_v8 }
  0x97   : > { %2887 = vst [vmem:[#allocation40_spill] sm:$0xff] %v2061_v45  ;;  %v766_v49 = vmul.f32 %v2020_v15, %v756_v36  ;;  %v838_v59 = vadd.f32 %v830_v10, %v820_v56  ;;  %v894_v52 = vmul.f32 %v2061_v45, %v1815_v3  ;;  %v2068_v29 = vstv %s1331_s29  ;;  %s1337_s20 = sld [smem:[#allocation6 + $0x1e]]  ;;  %s2714_s29 = scalar_lea.hbm %s2764_s4, %s1348_s9 }
  0x98   : > { %2888 = vst [vmem:[#allocation41_spill] sm:$0xff] %v2068_v29  ;;  %v912_v16 = vmul.f32 %v2068_v29, %v1828_v7  ;;  %v2072_v11 = vstv %s1332_s30  ;;  %s1338_s26 = sld [smem:[#allocation6 + $0x1f]]  ;;  %v668_v22 = vmul.f32 %v1988_v21, %v658_v51  ;;  %v704_v33 = vadd.f32 %v696_v40, %v686_v26  ;;  %s1163_s30 = scalar_lea.sflag [#allocation4], %s1785_s12 }
  0x99   : > { %2889 = vst [vmem:[#allocation42_spill] sm:$0xff] %v2072_v11  ;;  %v774_v17 = vadd.f32 %v766_v49, %v674_v27  ;;  %v848_v32 = vadd.f32 %v2048_v31, %v838_v59  ;;  %v902_v36 = vadd.f32 %v894_v52, %v884_v43  ;;  %v930_v10 = vmul.f32 %v2072_v11, %v1843_v12  ;;  %s1339_s21 = sld [smem:[#allocation7 + $0x7]] }
  0x9a   : > { %v2079_v56 = vstv %s2045_s5  ;;  %v2081_v54 = vstv %s1334_s7  ;;  %s1340_s6 = sld [smem:[#allocation9 + $0x7]]  ;;  %v676_v48 = vadd.f32 %v668_v22, %v576_v25  ;;  %v722_v38 = vadd.f32 %v714_v37, %v704_v33  ;;  %s1539_s7 = sshll.u32 %s1615_s19, 4  ;;  %s1540_s7 = int_to_ptr.vmem [resolvable:$false] %s1539_s7 }
  0x9b   : > { %v856_v14 = vmax.f32 %v848_v32, 0.0  ;;  %v920_v57 = vadd.f32 %v912_v16, %v902_v36  ;;  %v2083_v53 = vstv %s1335_s11  ;;  %v732_v27 = vmul.f32 %v2009_v50, %v1860_v18  ;;  %s1541_s11 = scalar_lea.vmem %s1540_s7, 2048 }
  0x9c   : > { %2890 = vst [vmem:[#allocation43_spill] sm:$0xff] %v2083_v53  ;;  %v984_v26 = vmul.f32 %v2083_v53, %v1804_v0  ;;  %v2089_v40 = vstv %s1336_s13  ;;  %v786_v43 = vmul.f32 %v2024_v62, %v1809_v1  ;;  %v796_v51 = vmul.f32 %v2030_v24, %v1820_v4 }
  0x9d   : > { %2891 = vst [vmem:[#allocation44_spill] sm:$0xff] %v2089_v40  ;;  %v866_v25 = vmul.f32 %v2050_v34, %v856_v14  ;;  %v938_v32 = vadd.f32 %v930_v10, %v920_v57  ;;  %v994_v16 = vmul.f32 %v2089_v40, %v1815_v3  ;;  %v2098_v33 = vstv %s1337_s20 }
  0x9e   : > { %2892 = vst [vmem:[#allocation45_spill] sm:$0xff] %v2098_v33  ;;  %v1012_v37 = vmul.f32 %v2098_v33, %v1828_v7  ;;  %v2102_v0 = vstv %s1338_s26  ;;  %v740_v49 = vadd.f32 %v732_v27, %v722_v38  ;;  %v804_v59 = vadd.f32 %v796_v51, %v786_v43 }
  0x9f   : > { %v874_v52 = vadd.f32 %v866_v25, %v774_v17  ;;  %v948_v22 = vadd.f32 %v2079_v56, %v938_v32  ;;  %v1002_v36 = vadd.f32 %v994_v16, %v984_v26  ;;  %v1030_v14 = vmul.f32 %v2102_v0, %v1843_v12 }
  0xa0   : > { %v2107_v57 = vstv %s1339_s21  ;;  %v2109_v10 = vstv %s1340_s6  ;;  %v750_v3 = vadd.f32 %v2018_v13, %v740_v49  ;;  %v814_v7 = vmul.f32 %v2036_v58, %v1833_v8 }
  0xa1   : > { %v956_v21 = vmax.f32 %v948_v22, 0.0  ;;  %v1020_v24 = vadd.f32 %v1012_v37, %v1002_v36  ;;  %v832_v17 = vmul.f32 %v2040_v6, %v1860_v18  ;;  %v886_v38 = vmul.f32 %v2055_v41, %v1809_v1 }
  0xa2   : > { %v758_v27 = vmax.f32 %v750_v3, 0.0  ;;  %v822_v26 = vadd.f32 %v814_v7, %v804_v59  ;;  %v896_v12 = vmul.f32 %v2061_v45, %v1820_v4  ;;  %v914_v43 = vmul.f32 %v2068_v29, %v1833_v8 }
  0xa3   : > { %v966_v51 = vmul.f32 %v2081_v54, %v956_v21  ;;  %v1038_v25 = vadd.f32 %v1030_v14, %v1020_v24  ;;  %v932_v32 = vmul.f32 %v2072_v11, %v1860_v18  ;;  %v986_v16 = vmul.f32 %v2083_v53, %v1809_v1 }
  0xa4   : > { %v768_v37 = vmul.f32 %v2020_v15, %v758_v27  ;;  %v840_v49 = vadd.f32 %v832_v17, %v822_v26  ;;  %v904_v22 = vadd.f32 %v896_v12, %v886_v38  ;;  %v996_v59 = vmul.f32 %v2089_v40, %v1820_v4 }
  0xa5   : > { %v974_v36 = vadd.f32 %v966_v51, %v874_v52  ;;  %v1048_v3 = vadd.f32 %v2107_v57, %v1038_v25  ;;  %v1014_v21 = vmul.f32 %v2098_v33, %v1833_v8  ;;  %v1032_v24 = vmul.f32 %v2102_v0, %v1860_v18 }
  0xa6   : > { %v776_v14 = vadd.f32 %v768_v37, %v676_v48  ;;  %v850_v7 = vadd.f32 %v2048_v31, %v840_v49  ;;  %v922_v1 = vadd.f32 %v914_v43, %v904_v22  ;;  %v1004_v13 = vadd.f32 %v996_v59, %v986_v16 }
  0xa7   : > { %v1056_v27 = vmax.f32 %v1048_v3, 0.0  ;;  %v357_v17 = vadd.f32 %v1881_v28, %v1929_v61  ;;  %v385_v4 = vmul.f32 %v1891_v35, %v1812_v2  ;;  %v395_v52 = vmul.f32 %v1900_v39, %v1823_v5 }
  0xa8   : > { %v858_v38 = vmax.f32 %v850_v7, 0.0  ;;  %v940_v8 = vadd.f32 %v932_v32, %v922_v1  ;;  %v1022_v26 = vadd.f32 %v1014_v21, %v1004_v13  ;;  %v413_v18 = vmul.f32 %v1907_v44, %v1836_v9 }
  0xa9   : > { %v1066_v48 = vmul.f32 %v2109_v10, %v1056_v27  ;;  %v365_v12 = vmax.f32 %v357_v17, 0.0  ;;  %v403_v43 = vadd.f32 %v395_v52, %v385_v4  ;;  %v431_v51 = vmul.f32 %v1911_v47, %v1865_v20 }
  0xaa   : > { %v868_v61 = vmul.f32 %v2050_v34, %v858_v38  ;;  %v950_v25 = vadd.f32 %v2079_v56, %v940_v8  ;;  %v1040_v16 = vadd.f32 %v1032_v24, %v1022_v26  ;;  %v485_v37 = vmul.f32 %v1927_v60, %v1812_v2  ;;  %v2894_v38 = vld [vmem:[#allocation22_spill] sm:$0xff] }
  0xab   : > { %v2151_v32 = vadd.f32 %v1066_v48, %v974_v36  ;;  %v375_v13 = vmul.f32 %v1884_v30, %v365_v12  ;;  %v421_v49 = vadd.f32 %v413_v18, %v403_v43  ;;  %v495_v22 = vmul.f32 %v1933_v63, %v1823_v5  ;;  %v2895_v18 = vld [vmem:[#allocation26_spill] sm:$0xff]  ;;  %v2896_v12 = vld [vmem:[#allocation29_spill] sm:$0xff] }
  0xac   : > { %v876_v59 = vadd.f32 %v868_v61, %v776_v14  ;;  %v958_v3 = vmax.f32 %v950_v25, 0.0  ;;  %v1050_v21 = vadd.f32 %v2107_v57, %v1040_v16  ;;  %v513_v7 = vmul.f32 %v1938_v19, %v1836_v9  ;;  %v2897_v16 = vld [vmem:[#allocation30_spill] sm:$0xff] }
  0xad   : > { %2893 = vst [vmem:[#allocation46_spill] sm:$0xff] %v2151_v32  ;;  %1082 = vmax.xlane.f32.xlu0 %v2151_v32  ;;  %v439_v24 = vadd.f32 %v431_v51, %v421_v49  ;;  %v503_v1 = vadd.f32 %v495_v22, %v485_v37  ;;  %v531_v36 = vmul.f32 %v1942_v23, %v1865_v20 }
  0xae   : > { %v585_v27 = vmul.f32 %v1961_v42, %v1812_v2  ;;  %v968_v17 = vmul.f32 %v2081_v54, %v958_v3  ;;  %v1058_v4 = vmax.f32 %v1050_v21, 0.0  ;;  %v595_v14 = vmul.f32 %v1967_v46, %v1823_v5  ;;  %v2898_v3 = vld [vmem:[#allocation31_spill] sm:$0xff] }
  0xaf   : > { %v613_v52 = vmul.f32 %v1972_v55, %v1836_v9  ;;  %v449_v8 = vadd.f32 %v2894_v38, %v439_v24  ;;  %v521_v26 = vadd.f32 %v513_v7, %v503_v1  ;;  %v631_v48 = vmul.f32 %v2895_v18, %v1865_v20 }
  0xb0   : > { %v685_v43 = vmul.f32 %v2896_v12, %v1812_v2  ;;  %v976_v51 = vadd.f32 %v968_v17, %v876_v59  ;;  %v1068_v61 = vmul.f32 %v2109_v10, %v1058_v4  ;;  %v603_v25 = vadd.f32 %v595_v14, %v585_v27  ;;  %v2900_v17 = vld [vmem:[#allocation23_spill] sm:$0xff]  ;;  %v2901_v4 = vld [vmem:[#allocation24_spill] sm:$0xff] }
  0xb1   : > { %v695_v37 = vmul.f32 %v2897_v16, %v1823_v5  ;;  %v457_v49 = vmax.f32 %v449_v8, 0.0  ;;  %v539_v22 = vadd.f32 %v531_v36, %v521_v26  ;;  %v713_v21 = vmul.f32 %v2898_v3, %v1836_v9  ;;  %v2902_v8 = vld [vmem:[#allocation35_spill] sm:$0xff] }
  0xb2   : > { %v731_v7 = vmul.f32 %v2009_v50, %v1865_v20  ;;  %v2181_v24 = vadd.f32 %v1068_v61, %v976_v51  ;;  %v621_v1 = vadd.f32 %v613_v52, %v603_v25  ;;  %v785_v59 = vmul.f32 %v2024_v62, %v1812_v2 }
  0xb3   : > { %v703_v32 = vadd.f32 %v695_v37, %v685_v43  ;;  %v467_v27 = vmul.f32 %v2900_v17, %v457_v49  ;;  %v549_v14 = vadd.f32 %v2901_v4, %v539_v22  ;;  %v795_v36 = vmul.f32 %v2902_v8, %v1823_v5  ;;  %v2903_v22 = vld [vmem:[#allocation27_spill] sm:$0xff] }
  0xb4   : > { %2899 = vst [vmem:[#allocation22_spill] sm:$0xff] %v2181_v24  ;;  %v813_v26 = vmul.f32 %v2036_v58, %v1836_v9  ;;  %1086 = vmax.xlane.f32.xlu1 %v2181_v24  ;;  %v639_v50 = vadd.f32 %v631_v48, %v621_v1  ;;  %v831_v52 = vmul.f32 %v2040_v6, %v1865_v20 }
  0xb5   : > { %v721_v51 = vadd.f32 %v713_v21, %v703_v32  ;;  %v885_v43 = vmul.f32 %v2055_v41, %v1812_v2  ;;  %v475_v61 = vadd.f32 %v467_v27, %v375_v13  ;;  %v557_v25 = vmax.f32 %v549_v14, 0.0  ;;  %v2904_v21 = vld [vmem:[#allocation25_spill] sm:$0xff]  ;;  %v2207_v27 = vld [vmem:[%s1789_s23 + $0x68] sm:$0xff] }
  0xb6   : > { %v803_v37 = vadd.f32 %v795_v36, %v785_v59  ;;  %v895_v49 = vmul.f32 %v2061_v45, %v1823_v5  ;;  %v649_v58 = vadd.f32 %v2903_v22, %v639_v50  ;;  %v913_v32 = vmul.f32 %v2068_v29, %v1836_v9  ;;  %v2905_v36 = vld [vmem:[#allocation33_spill] sm:$0xff] }
  0xb7   : > { %v739_v24 = vadd.f32 %v731_v7, %v721_v51  ;;  %v931_v48 = vmul.f32 %v2072_v11, %v1865_v20  ;;  %v567_v1 = vmul.f32 %v2904_v21, %v557_v25  ;;  %v985_v59 = vmul.f32 %v2083_v53, %v1812_v2  ;;  %v2215_v51 = vld [vmem:[%s1789_s23 + $0x70] sm:$0xff]  ;;  %v2218_v11 = vld [vmem:[%s1789_s23 + $0x78] sm:$0xff] }
  0xb8   : > { %v821_v41 = vadd.f32 %v813_v26, %v803_v37  ;;  %v903_v13 = vadd.f32 %v895_v49, %v885_v43  ;;  %v657_v14 = vmax.f32 %v649_v58, 0.0  ;;  %v995_v50 = vmul.f32 %v2089_v40, %v1823_v5  ;;  %v2906_v37 = vld [vmem:[#allocation28_spill] sm:$0xff] }
  0xb9   : > { %v749_v45 = vadd.f32 %v2905_v36, %v739_v24  ;;  %v1013_v7 = vmul.f32 %v2098_v33, %v1836_v9  ;;  %v575_v26 = vadd.f32 %v567_v1, %v475_v61  ;;  %v1031_v2 = vmul.f32 %v2102_v0, %v1865_v20  ;;  %v2907_v36 = vld [vmem:[#allocation16_spill] sm:$0xff]  ;;  %v2908_v33 = vld [vmem:[#allocation17_spill] sm:$0xff]  ;;  %v2909_v61 = vld [vmem:[#allocation18_spill] sm:$0xff] }
  0xba   : > { %v839_v43 = vadd.f32 %v831_v52, %v821_v41  ;;  %v921_v25 = vadd.f32 %v913_v32, %v903_v13  ;;  %v667_v58 = vmul.f32 %v2906_v37, %v657_v14  ;;  %v1003_v24 = vadd.f32 %v995_v50, %v985_v59  ;;  %v2910_v1 = vld [vmem:[#allocation21_spill] sm:$0xff]  ;;  %v2911_v14 = vld [vmem:[#allocation19_spill] sm:$0xff] }
  0xbb   : > { %v757_v49 = vmax.f32 %v749_v45, 0.0  ;;  %v289_v5 = vmul.f32 %v2907_v36, %v2207_v27  ;;  %v315_v53 = vmul.f32 %v2908_v33, %v2215_v51  ;;  %v341_v41 = vmul.f32 %v2909_v61, %v2218_v11 }
  0xbc   : > { %v849_v40 = vadd.f32 %v2048_v31, %v839_v43  ;;  %v939_v9 = vadd.f32 %v931_v48, %v921_v25  ;;  %v675_v52 = vadd.f32 %v667_v58, %v575_v26  ;;  %v1021_v20 = vadd.f32 %v1013_v7, %v1003_v24 }
  0xbd   : > { %v767_v32 = vmul.f32 %v2020_v15, %v757_v49  ;;  %v297_v13 = vadd.f32 %v289_v5, %v2910_v1  ;;  %v387_v50 = vmul.f32 %v1891_v35, %v2911_v14  ;;  %v397_v48 = vmul.f32 %v1900_v39, %v2207_v27 }
  0xbe   : > { %v857_v45 = vmax.f32 %v849_v40, 0.0  ;;  %v949_v59 = vadd.f32 %v2079_v56, %v939_v9  ;;  %v1039_v25 = vadd.f32 %v1031_v2, %v1021_v20  ;;  %v415_v26 = vmul.f32 %v1907_v44, %v2215_v51 }
  0xbf   : > { %v775_v43 = vadd.f32 %v767_v32, %v675_v52  ;;  %v323_v33 = vadd.f32 %v315_v53, %v297_v13  ;;  %v405_v49 = vadd.f32 %v397_v48, %v387_v50  ;;  %v433_v40 = vmul.f32 %v1911_v47, %v2218_v11 }
  0xc0   : > { %v867_v58 = vmul.f32 %v2050_v34, %v857_v45  ;;  %v957_v7 = vmax.f32 %v949_v59, 0.0  ;;  %v1049_v24 = vadd.f32 %v2107_v57, %v1039_v25  ;;  %v487_v9 = vmul.f32 %v1927_v60, %v2911_v14 }
  0xc1   : > { %v349_v5 = vadd.f32 %v341_v41, %v323_v33  ;;  %v497_v2 = vmul.f32 %v1933_v63, %v2207_v27  ;;  %v423_v32 = vadd.f32 %v415_v26, %v405_v49  ;;  %v515_v20 = vmul.f32 %v1938_v19, %v2215_v51 }
  0xc2   : > { %v875_v53 = vadd.f32 %v867_v58, %v775_v43  ;;  %v967_v52 = vmul.f32 %v2081_v54, %v957_v7  ;;  %v1057_v1 = vmax.f32 %v1049_v24, 0.0  ;;  %v533_v33 = vmul.f32 %v1942_v23, %v2218_v11 }
  0xc3   : > { %v359_v13 = vadd.f32 %v1881_v28, %v349_v5  ;;  %v505_v45 = vadd.f32 %v497_v2, %v487_v9  ;;  %v441_v59 = vadd.f32 %v433_v40, %v423_v32  ;;  %v587_v50 = vmul.f32 %v1961_v42, %v2911_v14 }
  0xc4   : > { %v975_v41 = vadd.f32 %v967_v52, %v875_v53  ;;  %v597_v48 = vmul.f32 %v1967_v46, %v2207_v27  ;;  %v1067_v43 = vmul.f32 %v2109_v10, %v1057_v1  ;;  %v615_v58 = vmul.f32 %v1972_v55, %v2215_v51  ;;  %v2913_v1 = vld [vmem:[#allocation32_spill] sm:$0xff] }
  0xc5   : > { %v367_v25 = vmax.f32 %v359_v13, 0.0  ;;  %v523_v26 = vadd.f32 %v515_v20, %v505_v45  ;;  %v451_v7 = vadd.f32 %v2894_v38, %v441_v59  ;;  %v633_v24 = vmul.f32 %v2895_v18, %v2218_v11 }
  0xc6   : > { %v605_v49 = vadd.f32 %v597_v48, %v587_v50  ;;  %v687_v40 = vmul.f32 %v2896_v12, %v2911_v14  ;;  %v2265_v5 = vadd.f32 %v1067_v43, %v975_v41  ;;  %v697_v53 = vmul.f32 %v2897_v16, %v2207_v27  ;;  %v2914_v43 = vld [vmem:[#allocation36_spill] sm:$0xff] }
  0xc7   : > { %v377_v9 = vmul.f32 %v1884_v30, %v367_v25  ;;  %v541_v2 = vadd.f32 %v533_v33, %v523_v26  ;;  %v459_v52 = vmax.f32 %v451_v7, 0.0  ;;  %v715_v20 = vmul.f32 %v2898_v3, %v2215_v51 }
  0xc8   : > { %2912 = vst [vmem:[#allocation26_spill] sm:$0xff] %v2265_v5  ;;  %v623_v32 = vadd.f32 %v615_v58, %v605_v49  ;;  %v733_v13 = vmul.f32 %v2913_v1, %v2218_v11  ;;  %1084 = vmax.xlane.f32.xlu0 %v2265_v5  ;;  %v705_v41 = vadd.f32 %v697_v53, %v687_v40  ;;  %v2915_v40 = vld [vmem:[#allocation39_spill] sm:$0xff] }
  0xc9   : > { %v551_v45 = vadd.f32 %v2901_v4, %v541_v2  ;;  %v787_v59 = vmul.f32 %v2024_v62, %v2911_v14  ;;  %v797_v33 = vmul.f32 %v2902_v8, %v2207_v27  ;;  %v469_v50 = vmul.f32 %v2900_v17, %v459_v52  ;;  %v2916_v52 = vld [vmem:[#allocation40_spill] sm:$0xff] }
  0xca   : > { %v641_v48 = vadd.f32 %v633_v24, %v623_v32  ;;  %v815_v25 = vmul.f32 %v2914_v43, %v2215_v51  ;;  %v833_v26 = vmul.f32 %v2040_v6, %v2218_v11  ;;  %v723_v7 = vadd.f32 %v715_v20, %v705_v41  ;;  %v2917_v20 = vld [vmem:[#allocation42_spill] sm:$0xff] }
  0xcb   : > { %v559_v58 = vmax.f32 %v551_v45, 0.0  ;;  %v805_v49 = vadd.f32 %v797_v33, %v787_v59  ;;  %v887_v2 = vmul.f32 %v2915_v40, %v2911_v14  ;;  %v477_v53 = vadd.f32 %v469_v50, %v377_v9  ;;  %v2918_v9 = vld [vmem:[#allocation43_spill] sm:$0xff]  ;;  %v2303_v40 = vld [vmem:[%s1789_s23 + $0x88] sm:$0xff] }
  0xcc   : > { %v651_v5 = vadd.f32 %v2903_v22, %v641_v48  ;;  %v897_v24 = vmul.f32 %v2916_v52, %v2207_v27  ;;  %v915_v32 = vmul.f32 %v2068_v29, %v2215_v51  ;;  %v741_v45 = vadd.f32 %v733_v13, %v723_v7  ;;  %v2919_v48 = vld [vmem:[#allocation44_spill] sm:$0xff]  ;;  %v2300_v52 = vld [vmem:[%s1789_s23 + $0x80] sm:$0xff]  ;;  %v2921_v7 = vld [vmem:[#allocation45_spill] sm:$0xff] }
  0xcd   : > { %v569_v6 = vmul.f32 %v2904_v21, %v559_v58  ;;  %v823_v17 = vadd.f32 %v815_v25, %v805_v49  ;;  %v933_v41 = vmul.f32 %v2917_v20, %v2218_v11  ;;  %v987_v50 = vmul.f32 %v2918_v9, %v2911_v14  ;;  %v2920_v58 = vld [vmem:[#allocation33_spill] sm:$0xff] }
  0xce   : > { %v659_v59 = vmax.f32 %v651_v5, 0.0  ;;  %v905_v33 = vadd.f32 %v897_v24, %v887_v2  ;;  %v997_v22 = vmul.f32 %v2919_v48, %v2207_v27  ;;  %v751_v13 = vadd.f32 %v2920_v58, %v741_v45  ;;  %v2309_v21 = vld [vmem:[%s1789_s23 + $0x90] sm:$0xff]  ;;  %v2315_v24 = vld [vmem:[%s1789_s23 + $0x98] sm:$0xff] }
  0xcf   : > { %v577_v29 = vadd.f32 %v569_v6, %v477_v53  ;;  %v841_v25 = vadd.f32 %v833_v26, %v823_v17  ;;  %v1015_v49 = vmul.f32 %v2921_v7, %v2215_v51  ;;  %v1033_v27 = vmul.f32 %v2102_v0, %v2218_v11  ;;  %v2922_v53 = vld [vmem:[#allocation15_spill] sm:$0xff] }
  0xd0   : > { %v669_v5 = vmul.f32 %v2906_v37, %v659_v59  ;;  %v923_v2 = vadd.f32 %v915_v32, %v905_v33  ;;  %v1005_v14 = vadd.f32 %v997_v22, %v987_v50  ;;  %v759_v48 = vmax.f32 %v751_v13, 0.0  ;;  %v2923_v32 = vld [vmem:[#allocation17_spill] sm:$0xff] }
  0xd1   : > { %v851_v6 = vadd.f32 %v2048_v31, %v841_v25  ;;  %v272_v17 = vmul.f32 %v2922_v53, %v2300_v52  ;;  %v290_v51 = vmul.f32 %v2907_v36, %v2303_v40  ;;  %v316_v22 = vmul.f32 %v2923_v32, %v2309_v21 }
  0xd2   : > { %v677_v26 = vadd.f32 %v669_v5, %v577_v29  ;;  %v941_v45 = vadd.f32 %v933_v41, %v923_v2  ;;  %v1023_v58 = vadd.f32 %v1015_v49, %v1005_v14  ;;  %v769_v59 = vmul.f32 %v2020_v15, %v759_v48 }
  0xd3   : > { %v859_v11 = vmax.f32 %v851_v6, 0.0  ;;  %v298_v33 = vadd.f32 %v290_v51, %v272_v17  ;;  %v342_v50 = vmul.f32 %v2909_v61, %v2315_v24  ;;  %v388_v31 = vmul.f32 %v1891_v35, %v2300_v52 }
  0xd4   : > { %v951_v13 = vadd.f32 %v2079_v56, %v941_v45  ;;  %v1041_v25 = vadd.f32 %v1033_v27, %v1023_v58  ;;  %v398_v29 = vmul.f32 %v1900_v39, %v2303_v40  ;;  %v777_v41 = vadd.f32 %v769_v59, %v677_v26 }
  0xd5   : > { %v869_v49 = vmul.f32 %v2050_v34, %v859_v11  ;;  %v324_v5 = vadd.f32 %v316_v22, %v298_v33  ;;  %v416_v48 = vmul.f32 %v1907_v44, %v2309_v21  ;;  %v434_v58 = vmul.f32 %v1911_v47, %v2315_v24 }
  0xd6   : > { %v959_v2 = vmax.f32 %v951_v13, 0.0  ;;  %v1051_v14 = vadd.f32 %v2107_v57, %v1041_v25  ;;  %v406_v6 = vadd.f32 %v398_v29, %v388_v31  ;;  %v488_v51 = vmul.f32 %v1927_v60, %v2300_v52 }
  0xd7   : > { %v877_v27 = vadd.f32 %v869_v49, %v777_v41  ;;  %v350_v17 = vadd.f32 %v342_v50, %v324_v5  ;;  %v498_v26 = vmul.f32 %v1933_v63, %v2303_v40  ;;  %v516_v11 = vmul.f32 %v1938_v19, %v2309_v21 }
  0xd8   : > { %v969_v45 = vmul.f32 %v2081_v54, %v959_v2  ;;  %v1059_v22 = vmax.f32 %v1051_v14, 0.0  ;;  %v424_v59 = vadd.f32 %v416_v48, %v406_v6  ;;  %v534_v13 = vmul.f32 %v1942_v23, %v2315_v24 }
  0xd9   : > { %v360_v31 = vadd.f32 %v1881_v28, %v350_v17  ;;  %v506_v33 = vadd.f32 %v498_v26, %v488_v51  ;;  %v588_v50 = vmul.f32 %v1961_v42, %v2300_v52  ;;  %v598_v49 = vmul.f32 %v1967_v46, %v2303_v40 }
  0xda   : > { %v977_v25 = vadd.f32 %v969_v45, %v877_v27  ;;  %v1069_v29 = vmul.f32 %v2109_v10, %v1059_v22  ;;  %v442_v41 = vadd.f32 %v434_v58, %v424_v59  ;;  %v616_v2 = vmul.f32 %v1972_v55, %v2309_v21 }
  0xdb   : > { %v368_v5 = vmax.f32 %v360_v31, 0.0  ;;  %v524_v48 = vadd.f32 %v516_v11, %v506_v33  ;;  %v634_v14 = vmul.f32 %v2895_v18, %v2315_v24  ;;  %v606_v51 = vadd.f32 %v598_v49, %v588_v50 }
  0xdc   : > { %v2357_v6 = vadd.f32 %v1069_v29, %v977_v25  ;;  %v452_v17 = vadd.f32 %v2894_v38, %v442_v41  ;;  %v688_v27 = vmul.f32 %v2896_v12, %v2300_v52  ;;  %v698_v45 = vmul.f32 %v2897_v16, %v2303_v40  ;;  %v2925_v41 = vld [vmem:[#allocation23_spill] sm:$0xff] }
  0xdd   : > { %v378_v58 = vmul.f32 %v1884_v30, %v368_v5  ;;  %v542_v26 = vadd.f32 %v534_v13, %v524_v48  ;;  %v716_v22 = vmul.f32 %v2898_v3, %v2309_v21  ;;  %v624_v11 = vadd.f32 %v616_v2, %v606_v51  ;;  %v2926_v48 = vld [vmem:[#allocation37_spill] sm:$0xff] }
  0xde   : > { %2924 = vst [vmem:[#allocation28_spill] sm:$0xff] %v2357_v6  ;;  %1088 = vmax.xlane.f32.xlu1 %v2357_v6  ;;  %v460_v59 = vmax.f32 %v452_v17, 0.0  ;;  %v734_v31 = vmul.f32 %v2913_v1, %v2315_v24  ;;  %v788_v33 = vmul.f32 %v2024_v62, %v2300_v52  ;;  %v706_v25 = vadd.f32 %v698_v45, %v688_v27  ;;  %v2927_v17 = vld [vmem:[#allocation39_spill] sm:$0xff] }
  0xdf   : > { %v552_v50 = vadd.f32 %v2901_v4, %v542_v26  ;;  %v798_v13 = vmul.f32 %v2902_v8, %v2303_v40  ;;  %v816_v29 = vmul.f32 %v2914_v43, %v2309_v21  ;;  %v642_v5 = vadd.f32 %v634_v14, %v624_v11  ;;  %v2928_v26 = vld [vmem:[#allocation40_spill] sm:$0xff]  ;;  %v2929_v4 = vld [vmem:[#allocation27_spill] sm:$0xff]  ;;  %v2931_v11 = vld [vmem:[#allocation25_spill] sm:$0xff] }
  0xe0   : > { %v470_v49 = vmul.f32 %v2925_v41, %v460_v59  ;;  %v834_v2 = vmul.f32 %v2926_v48, %v2315_v24  ;;  %v888_v51 = vmul.f32 %v2927_v17, %v2300_v52  ;;  %v724_v62 = vadd.f32 %v716_v22, %v706_v25  ;;  %v2930_v59 = vld [vmem:[#allocation41_spill] sm:$0xff] }
  0xe1   : > { %v560_v6 = vmax.f32 %v552_v50, 0.0  ;;  %v806_v27 = vadd.f32 %v798_v13, %v788_v33  ;;  %v898_v45 = vmul.f32 %v2928_v26, %v2303_v40  ;;  %v652_v43 = vadd.f32 %v2929_v4, %v642_v5  ;;  %v2391_v33 = vld [vmem:[%s1789_s23 + $0xa0] sm:$0xff]  ;;  %v2933_v26 = vld [vmem:[#allocation33_spill] sm:$0xff] }
  0xe2   : > { %v478_v8 = vadd.f32 %v470_v49, %v378_v58  ;;  %v916_v41 = vmul.f32 %v2930_v59, %v2309_v21  ;;  %v934_v14 = vmul.f32 %v2917_v20, %v2315_v24  ;;  %v742_v50 = vadd.f32 %v734_v31, %v724_v62  ;;  %v2932_v49 = vld [vmem:[#allocation44_spill] sm:$0xff] }
  0xe3   : > { %v570_v17 = vmul.f32 %v2931_v11, %v560_v6  ;;  %v824_v22 = vadd.f32 %v816_v29, %v806_v27  ;;  %v906_v25 = vadd.f32 %v898_v45, %v888_v51  ;;  %v660_v13 = vmax.f32 %v652_v43, 0.0  ;;  %v2400_v59 = vld [vmem:[%s1789_s23 + $0xa8] sm:$0xff]  ;;  %v2404_v29 = vld [vmem:[%s1789_s23 + $0xb0] sm:$0xff]  ;;  %v2407_v51 = vld [vmem:[%s1789_s23 + $0xb8] sm:$0xff] }
  0xe4   : > { %v988_v58 = vmul.f32 %v2918_v9, %v2300_v52  ;;  %v998_v5 = vmul.f32 %v2932_v49, %v2303_v40  ;;  %v1016_v4 = vmul.f32 %v2921_v7, %v2309_v21  ;;  %v752_v6 = vadd.f32 %v2933_v26, %v742_v50  ;;  %v2934_v45 = vld [vmem:[#allocation38_spill] sm:$0xff] }
  0xe5   : > { %v578_v20 = vadd.f32 %v570_v17, %v478_v8  ;;  %v842_v62 = vadd.f32 %v834_v2, %v824_v22  ;;  %v924_v31 = vadd.f32 %v916_v41, %v906_v25  ;;  %v670_v43 = vmul.f32 %v2906_v37, %v660_v13 }
  0xe6   : > { %v1006_v52 = vadd.f32 %v998_v5, %v988_v58  ;;  %v1034_v40 = vmul.f32 %v2102_v0, %v2315_v24  ;;  %v273_v21 = vmul.f32 %v2922_v53, %v2391_v33  ;;  %v760_v27 = vmax.f32 %v752_v6, 0.0 }
  0xe7   : > { %v852_v8 = vadd.f32 %v2934_v45, %v842_v62  ;;  %v942_v17 = vadd.f32 %v934_v14, %v924_v31  ;;  %v291_v41 = vmul.f32 %v2907_v36, %v2400_v59  ;;  %v678_v2 = vadd.f32 %v670_v43, %v578_v20 }
  0xe8   : > { %v1024_v50 = vadd.f32 %v1016_v4, %v1006_v52  ;;  %v317_v22 = vmul.f32 %v2923_v32, %v2404_v29  ;;  %v343_v25 = vmul.f32 %v2909_v61, %v2407_v51  ;;  %v770_v24 = vmul.f32 %v2020_v15, %v760_v27 }
  0xe9   : > { %v860_v13 = vmax.f32 %v852_v8, 0.0  ;;  %v952_v58 = vadd.f32 %v2079_v56, %v942_v17  ;;  %v299_v5 = vadd.f32 %v291_v41, %v273_v21  ;;  %v389_v14 = vmul.f32 %v1891_v35, %v2391_v33 }
  0xea   : > { %v1042_v6 = vadd.f32 %v1034_v40, %v1024_v50  ;;  %v399_v20 = vmul.f32 %v1900_v39, %v2400_v59  ;;  %v417_v4 = vmul.f32 %v1907_v44, %v2404_v29  ;;  %v778_v62 = vadd.f32 %v770_v24, %v678_v2 }
  0xeb   : > { %v870_v31 = vmul.f32 %v2050_v34, %v860_v13  ;;  %v960_v43 = vmax.f32 %v952_v58, 0.0  ;;  %v325_v52 = vadd.f32 %v317_v22, %v299_v5  ;;  %v435_v40 = vmul.f32 %v1911_v47, %v2407_v51 }
  0xec   : > { %v1052_v27 = vadd.f32 %v2107_v57, %v1042_v6  ;;  %v407_v8 = vadd.f32 %v399_v20, %v389_v14  ;;  %v489_v21 = vmul.f32 %v1927_v60, %v2391_v33  ;;  %v499_v2 = vmul.f32 %v1933_v63, %v2400_v59 }
  0xed   : > { %v878_v17 = vadd.f32 %v870_v31, %v778_v62  ;;  %v970_v41 = vmul.f32 %v2081_v54, %v960_v43  ;;  %v351_v50 = vadd.f32 %v343_v25, %v325_v52  ;;  %v517_v22 = vmul.f32 %v1938_v19, %v2404_v29 }
  0xee   : > { %v1060_v24 = vmax.f32 %v1052_v27, 0.0  ;;  %v425_v13 = vadd.f32 %v417_v4, %v407_v8  ;;  %v535_v58 = vmul.f32 %v1942_v23, %v2407_v51  ;;  %v507_v14 = vadd.f32 %v499_v2, %v489_v21 }
  0xef   : > { %v978_v5 = vadd.f32 %v970_v41, %v878_v17  ;;  %v361_v6 = vadd.f32 %v1881_v28, %v351_v50  ;;  %v589_v20 = vmul.f32 %v1961_v42, %v2391_v33  ;;  %v599_v31 = vmul.f32 %v1967_v46, %v2400_v59 }
  0xf0   : > { %v1070_v25 = vmul.f32 %v2109_v10, %v1060_v24  ;;  %v443_v62 = vadd.f32 %v435_v40, %v425_v13  ;;  %v617_v4 = vmul.f32 %v1972_v55, %v2404_v29  ;;  %v525_v52 = vadd.f32 %v517_v22, %v507_v14  ;;  %v2936_v14 = vld [vmem:[#allocation34_spill] sm:$0xff] }
  0xf1   : > { %v369_v43 = vmax.f32 %v361_v6, 0.0  ;;  %v635_v27 = vmul.f32 %v2895_v18, %v2407_v51  ;;  %v689_v8 = vmul.f32 %v2896_v12, %v2391_v33  ;;  %v607_v41 = vadd.f32 %v599_v31, %v589_v20  ;;  %v2938_v31 = vld [vmem:[#allocation35_spill] sm:$0xff] }
  0xf2   : > { %v2454_v21 = vadd.f32 %v1070_v25, %v978_v5  ;;  %v453_v17 = vadd.f32 %v2894_v38, %v443_v62  ;;  %v699_v40 = vmul.f32 %v2897_v16, %v2400_v59  ;;  %v543_v2 = vadd.f32 %v535_v58, %v525_v52  ;;  %v2937_v25 = vld [vmem:[#allocation24_spill] sm:$0xff] }
  0xf3   : > { %v379_v50 = vmul.f32 %v1884_v30, %v369_v43  ;;  %v717_v24 = vmul.f32 %v2898_v3, %v2404_v29  ;;  %v735_v13 = vmul.f32 %v2913_v1, %v2407_v51  ;;  %v625_v5 = vadd.f32 %v617_v4, %v607_v41  ;;  %v2939_v58 = vld [vmem:[#allocation36_spill] sm:$0xff]  ;;  %v2940_v1 = vld [vmem:[#allocation23_spill] sm:$0xff] }
  0xf4   : > { %2935 = vst [vmem:[#allocation16_spill] sm:$0xff] %v2454_v21  ;;  %1090 = vmax.xlane.f32.xlu0 %v2454_v21  ;;  %v461_v22 = vmax.f32 %v453_v17, 0.0  ;;  %v707_v6 = vadd.f32 %v699_v40, %v689_v8  ;;  %v789_v20 = vmul.f32 %v2936_v14, %v2391_v33  ;;  %v553_v62 = vadd.f32 %v2937_v25, %v543_v2  ;;  %v2941_v8 = vld [vmem:[#allocation39_spill] sm:$0xff]  ;;  %v2942_v2 = vld [vmem:[#allocation40_spill] sm:$0xff]  ;;  %v2943_v14 = vld [vmem:[#allocation41_spill] sm:$0xff] }
  0xf5   : > { %v799_v43 = vmul.f32 %v2938_v31, %v2400_v59  ;;  %v817_v52 = vmul.f32 %v2939_v58, %v2404_v29  ;;  %v835_v3 = vmul.f32 %v2926_v48, %v2407_v51  ;;  %v643_v17 = vadd.f32 %v635_v27, %v625_v5  ;;  %v2944_v48 = vld [vmem:[#allocation27_spill] sm:$0xff]  ;;  %v2945_v27 = vld [vmem:[#allocation42_spill] sm:$0xff] }
  0xf6   : > { %v471_v30 = vmul.f32 %v2940_v1, %v461_v22  ;;  %v725_v4 = vadd.f32 %v717_v24, %v707_v6  ;;  %v889_v41 = vmul.f32 %v2941_v8, %v2391_v33  ;;  %v561_v40 = vmax.f32 %v553_v62, 0.0 }
  0xf7   : > { %v807_v21 = vadd.f32 %v799_v43, %v789_v20  ;;  %v899_v31 = vmul.f32 %v2942_v2, %v2400_v59  ;;  %v917_v58 = vmul.f32 %v2943_v14, %v2404_v29  ;;  %v653_v16 = vadd.f32 %v2944_v48, %v643_v17  ;;  %v2488_v43 = vld [vmem:[%s1789_s23 + $0xc0] sm:$0xff]  ;;  %v2499_v17 = vld [vmem:[%s1789_s23 + $0xd0] sm:$0xff] }
  0xf8   : > { %v479_v25 = vadd.f32 %v471_v30, %v379_v50  ;;  %v743_v22 = vadd.f32 %v735_v13, %v725_v4  ;;  %v935_v24 = vmul.f32 %v2945_v27, %v2407_v51  ;;  %v571_v5 = vmul.f32 %v2931_v11, %v561_v40  ;;  %v2496_v13 = vld [vmem:[%s1789_s23 + $0xc8] sm:$0xff]  ;;  %v2504_v4 = vld [vmem:[%s1789_s23 + $0xd8] sm:$0xff] }
  0xf9   : > { %v825_v6 = vadd.f32 %v817_v52, %v807_v21  ;;  %v907_v20 = vadd.f32 %v899_v31, %v889_v41  ;;  %v989_v62 = vmul.f32 %v2918_v9, %v2391_v33  ;;  %v661_v2 = vmax.f32 %v653_v16, 0.0 }
  0xfa   : > { %v753_v14 = vadd.f32 %v2933_v26, %v743_v22  ;;  %v999_v30 = vmul.f32 %v2932_v49, %v2400_v59  ;;  %v1017_v50 = vmul.f32 %v2921_v7, %v2404_v29  ;;  %v579_v21 = vadd.f32 %v571_v5, %v479_v25 }
  0xfb   : > { %v843_v31 = vadd.f32 %v835_v3, %v825_v6  ;;  %v925_v52 = vadd.f32 %v917_v58, %v907_v20  ;;  %v1035_v33 = vmul.f32 %v2102_v0, %v2407_v51  ;;  %v671_v16 = vmul.f32 %v2906_v37, %v661_v2 }
  0xfc   : > { %v761_v41 = vmax.f32 %v753_v14, 0.0  ;;  %v1007_v40 = vadd.f32 %v999_v30, %v989_v62  ;;  %v274_v59 = vmul.f32 %v2922_v53, %v2488_v43  ;;  %v292_v25 = vmul.f32 %v2907_v36, %v2496_v13 }
  0xfd   : > { %v853_v29 = vadd.f32 %v2934_v45, %v843_v31  ;;  %v943_v22 = vadd.f32 %v935_v24, %v925_v52  ;;  %v318_v3 = vmul.f32 %v2923_v32, %v2499_v17  ;;  %v679_v58 = vadd.f32 %v671_v16, %v579_v21 }
  0xfe   : > { %v771_v51 = vmul.f32 %v2020_v15, %v761_v41  ;;  %v1025_v5 = vadd.f32 %v1017_v50, %v1007_v40  ;;  %v344_v14 = vmul.f32 %v2909_v61, %v2504_v4  ;;  %v300_v20 = vadd.f32 %v292_v25, %v274_v59 }
  0xff   : > { %v861_v2 = vmax.f32 %v853_v29, 0.0  ;;  %v953_v6 = vadd.f32 %v2079_v56, %v943_v22  ;;  %v390_v24 = vmul.f32 %v1891_v35, %v2488_v43  ;;  %v400_v31 = vmul.f32 %v1900_v39, %v2496_v13 }
 0x100   : > { %v779_v62 = vadd.f32 %v771_v51, %v679_v58  ;;  %v1043_v30 = vadd.f32 %v1035_v33, %v1025_v5  ;;  %v418_v21 = vmul.f32 %v1907_v44, %v2499_v17  ;;  %v326_v16 = vadd.f32 %v318_v3, %v300_v20 }
 0x101   : > { %v871_v50 = vmul.f32 %v2050_v34, %v861_v2  ;;  %v961_v52 = vmax.f32 %v953_v6, 0.0  ;;  %v436_v41 = vmul.f32 %v1911_v47, %v2504_v4  ;;  %v408_v59 = vadd.f32 %v400_v31, %v390_v24 }
 0x102   : > { %v1053_v40 = vadd.f32 %v2107_v57, %v1043_v30  ;;  %v490_v29 = vmul.f32 %v1927_v60, %v2488_v43  ;;  %v500_v33 = vmul.f32 %v1933_v63, %v2496_v13  ;;  %v352_v58 = vadd.f32 %v344_v14, %v326_v16 }
 0x103   : > { %v879_v22 = vadd.f32 %v871_v50, %v779_v62  ;;  %v971_v25 = vmul.f32 %v2081_v54, %v961_v52  ;;  %v518_v51 = vmul.f32 %v1938_v19, %v2499_v17  ;;  %v426_v5 = vadd.f32 %v418_v21, %v408_v59 }
 0x104   : > { %v1061_v3 = vmax.f32 %v1053_v40, 0.0  ;;  %v508_v2 = vadd.f32 %v500_v33, %v490_v29  ;;  %v536_v6 = vmul.f32 %v1942_v23, %v2504_v4  ;;  %v362_v24 = vadd.f32 %v1881_v28, %v352_v58  ;;  %v2948_v58 = vld [vmem:[#allocation20_spill] sm:$0xff] }
 0x105   : > { %v979_v20 = vadd.f32 %v971_v25, %v879_v22  ;;  %v590_v30 = vmul.f32 %v1961_v42, %v2488_v43  ;;  %v600_v62 = vmul.f32 %v1967_v46, %v2496_v13  ;;  %v444_v31 = vadd.f32 %v436_v41, %v426_v5  ;;  %v2947_v25 = vld [vmem:[#allocation30_spill] sm:$0xff]  ;;  %v2949_v5 = vld [vmem:[#allocation31_spill] sm:$0xff] }
 0x106   : > { %v1071_v14 = vmul.f32 %v2109_v10, %v1061_v3  ;;  %v526_v50 = vadd.f32 %v518_v51, %v508_v2  ;;  %v618_v21 = vmul.f32 %v1972_v55, %v2499_v17  ;;  %v370_v52 = vmax.f32 %v362_v24, 0.0  ;;  %v2950_v24 = vld [vmem:[#allocation32_spill] sm:$0xff] }
 0x107   : > { %v608_v16 = vadd.f32 %v600_v62, %v590_v30  ;;  %v636_v40 = vmul.f32 %v2895_v18, %v2504_v4  ;;  %v690_v59 = vmul.f32 %v2896_v12, %v2488_v43  ;;  %v454_v33 = vadd.f32 %v2894_v38, %v444_v31 }
 0x108   : > { %v2549_v29 = vadd.f32 %v1071_v14, %v979_v20  ;;  %v544_v22 = vadd.f32 %v536_v6, %v526_v50  ;;  %v700_v41 = vmul.f32 %v2947_v25, %v2496_v13  ;;  %v380_v51 = vmul.f32 %v2948_v58, %v370_v52  ;;  %v2951_v20 = vld [vmem:[#allocation24_spill] sm:$0xff]  ;;  %v2952_v6 = vld [vmem:[#allocation34_spill] sm:$0xff]  ;;  %v2953_v25 = vld [vmem:[#allocation35_spill] sm:$0xff] }
 0x109   : > { %v626_v3 = vadd.f32 %v618_v21, %v608_v16  ;;  %v718_v2 = vmul.f32 %v2949_v5, %v2499_v17  ;;  %v736_v30 = vmul.f32 %v2950_v24, %v2504_v4  ;;  %v462_v62 = vmax.f32 %v454_v33, 0.0  ;;  %v2954_v21 = vld [vmem:[#allocation36_spill] sm:$0xff]  ;;  %v2955_v5 = vld [vmem:[#allocation37_spill] sm:$0xff] }
 0x10a   : > { %2946 = vst [vmem:[#allocation18_spill] sm:$0xff] %v2549_v29  ;;  %1092 = vmax.xlane.f32.xlu1 %v2549_v29  ;;  %v554_v14 = vadd.f32 %v2951_v20, %v544_v22  ;;  %v708_v12 = vadd.f32 %v700_v41, %v690_v59  ;;  %v790_v31 = vmul.f32 %v2952_v6, %v2488_v43 }
 0x10b   : > { %v644_v50 = vadd.f32 %v636_v40, %v626_v3  ;;  %v800_v52 = vmul.f32 %v2953_v25, %v2496_v13  ;;  %v818_v16 = vmul.f32 %v2954_v21, %v2499_v17  ;;  %v836_v58 = vmul.f32 %v2955_v5, %v2504_v4  ;;  %v2956_v3 = vld [vmem:[#allocation40_spill] sm:$0xff]  ;;  %v2957_v21 = vld [vmem:[#allocation41_spill] sm:$0xff] }
 0x10c   : > { %v472_v24 = vmul.f32 %v2940_v1, %v462_v62  ;;  %v562_v33 = vmax.f32 %v554_v14, 0.0  ;;  %v726_v22 = vadd.f32 %v718_v2, %v708_v12  ;;  %v890_v59 = vmul.f32 %v2941_v8, %v2488_v43 }
 0x10d   : > { %v654_v40 = vadd.f32 %v2944_v48, %v644_v50  ;;  %v808_v41 = vadd.f32 %v800_v52, %v790_v31  ;;  %v900_v29 = vmul.f32 %v2956_v3, %v2496_v13  ;;  %v918_v25 = vmul.f32 %v2957_v21, %v2499_v17  ;;  %v2583_v50 = vld [vmem:[%s1789_s23 + $0xe0] sm:$0xff]  ;;  %v2586_v52 = vld [vmem:[%s1789_s23 + $0xe8] sm:$0xff] }
 0x10e   : > { %v480_v5 = vadd.f32 %v472_v24, %v380_v51  ;;  %v572_v62 = vmul.f32 %v2931_v11, %v562_v33  ;;  %v744_v1 = vadd.f32 %v736_v30, %v726_v22  ;;  %v936_v12 = vmul.f32 %v2945_v27, %v2504_v4  ;;  %v2594_v33 = vld [vmem:[%s1789_s23 + $0xf0] sm:$0xff] }
 0x10f   : > { %v662_v2 = vmax.f32 %v654_v40, 0.0  ;;  %v826_v14 = vadd.f32 %v818_v16, %v808_v41  ;;  %v908_v8 = vadd.f32 %v900_v29, %v890_v59  ;;  %v990_v31 = vmul.f32 %v2918_v9, %v2488_v43  ;;  %v2600_v59 = vld [vmem:[%s1789_s23 + $0xf8] sm:$0xff]  ;;  %s1295_s23 = sshll.u32 %s1785_s12, 6 }
 0x110   : > { %v580_v3 = vadd.f32 %v572_v62, %v480_v5  ;;  %v754_v51 = vadd.f32 %v2933_v26, %v744_v1  ;;  %v1000_v24 = vmul.f32 %v2932_v49, %v2496_v13  ;;  %v1018_v30 = vmul.f32 %v2921_v7, %v2499_v17  ;;  %s2700_s8 = scalar_lea.vmem [#allocation10], %s1295_s23 }
 0x111   : > { %v672_v29 = vmul.f32 %v2906_v37, %v662_v2  ;;  %v844_v16 = vadd.f32 %v836_v58, %v826_v14  ;;  %v926_v22 = vadd.f32 %v918_v25, %v908_v8  ;;  %v1036_v43 = vmul.f32 %v2102_v0, %v2504_v4  ;;  %s1176_s10 = sshll.u32 %s2700_s8, 4  ;;  %s2716_s10 = int_to_ptr.vmem [resolvable:$true] %s1176_s10 }
 0x112   : > { %v762_v5 = vmax.f32 %v754_v51, 0.0  ;;  %v1008_v40 = vadd.f32 %v1000_v24, %v990_v31  ;;  %v275_v1 = vmul.f32 %v2922_v53, %v2583_v50  ;;  %v293_v13 = vmul.f32 %v2907_v36, %v2586_v52  ;;  %s1535_s5 = scalar_lea.vmem %s2716_s10, 1024  ;;  %p1542_p12 = scmp.lt.s32.totalorder %s2716_s10, %s1540_s7 }
 0x113   : > { %v680_v17 = vadd.f32 %v672_v29, %v580_v3  ;;  %v854_v41 = vadd.f32 %v2934_v45, %v844_v16  ;;  %v944_v62 = vadd.f32 %v936_v12, %v926_v22  ;;  %v319_v8 = vmul.f32 %v2923_v32, %v2594_v33  ;;  %p1536_p8 = scmp.ne.s32.totalorder %s2716_s10, %s1535_s5  ;;  %p1543_p0 = scmp.lt.s32.totalorder %s1541_s11, %s1535_s5 }
 0x114   : > { %v772_v25 = vmul.f32 %v2020_v15, %v762_v5  ;;  %v1026_v4 = vadd.f32 %v1018_v30, %v1008_v40  ;;  %v301_v58 = vadd.f32 %v293_v13, %v275_v1  ;;  %v345_v2 = vmul.f32 %v2909_v61, %v2600_v59 }
 0x115   : > { %v862_v14 = vmax.f32 %v854_v41, 0.0  ;;  %v954_v53 = vadd.f32 %v2079_v56, %v944_v62  ;;  %v391_v36 = vmul.f32 %v1891_v35, %v2583_v50  ;;  %v401_v3 = vmul.f32 %v1900_v39, %v2586_v52  ;;  %p1537_p7 = pnand %p1536_p8, %p2975_p13  ;;  %p1544_p3 = por %p1543_p0, %p1542_p12 }
 0x116   : > { %v780_v12 = vadd.f32 %v772_v25, %v680_v17  ;;  %v1044_v31 = vadd.f32 %v1036_v43, %v1026_v4  ;;  %v327_v51 = vadd.f32 %v319_v8, %v301_v58  ;;  %v419_v32 = vmul.f32 %v1907_v44, %v2594_v33 }
 0x117   : > { %v872_v24 = vmul.f32 %v2050_v34, %v862_v14  ;;  %v962_v30 = vmax.f32 %v954_v53, 0.0  ;;  %v409_v29 = vadd.f32 %v401_v3, %v391_v36  ;;  %v437_v61 = vmul.f32 %v1911_v47, %v2600_v59  ;;  %v2959_v53 = vld [vmem:[#allocation20_spill] sm:$0xff]  ;;  %v2960_v3 = vld [vmem:[#allocation30_spill] sm:$0xff]  ;;  %p1538_p10 = pneg %p1537_p7 }
 0x118   : > { %v1054_v16 = vadd.f32 %v2107_v57, %v1044_v31  ;;  %v353_v22 = vadd.f32 %v345_v2, %v327_v51  ;;  %v491_v35 = vmul.f32 %v1927_v60, %v2583_v50  ;;  %v501_v39 = vmul.f32 %v1933_v63, %v2586_v52  ;;  %v2958_v2 = vld [vmem:[#allocation29_spill] sm:$0xff] }
 0x119   : > { %v880_v43 = vadd.f32 %v872_v24, %v780_v12  ;;  %v972_v5 = vmul.f32 %v2081_v54, %v962_v30  ;;  %v427_v44 = vadd.f32 %v419_v32, %v409_v29  ;;  %v519_v40 = vmul.f32 %v1938_v19, %v2594_v33  ;;  %v2962_v32 = vld [vmem:[#allocation32_spill] sm:$0xff]  ;;  %p1545_p2 = pnand %p1544_p3, %p1538_p10 }
 0x11a   : > { %v1062_v1 = vmax.f32 %v1054_v16, 0.0  ;;  %v363_v13 = vadd.f32 %v1881_v28, %v353_v22  ;;  %v509_v47 = vadd.f32 %v501_v39, %v491_v35  ;;  %v537_v17 = vmul.f32 %v1942_v23, %v2600_v59  ;;  %v2964_v22 = vld [vmem:[#allocation23_spill] sm:$0xff] }
 0x11b   : > { %v980_v41 = vadd.f32 %v972_v5, %v880_v43  ;;  %v445_v62 = vadd.f32 %v437_v61, %v427_v44  ;;  %v591_v60 = vmul.f32 %v1961_v42, %v2583_v50  ;;  %v601_v63 = vmul.f32 %v1967_v46, %v2586_v52  ;;  %v2963_v61 = vld [vmem:[#allocation35_spill] sm:$0xff]  ;;  %v2965_v43 = vld [vmem:[#allocation36_spill] sm:$0xff]  ;;  %v2966_v44 = vld [vmem:[#allocation37_spill] sm:$0xff] }
 0x11c   : > { %v1072_v8 = vmul.f32 %v2109_v10, %v1062_v1  ;;  %v371_v25 = vmax.f32 %v363_v13, 0.0  ;;  %v527_v4 = vadd.f32 %v519_v40, %v509_v47  ;;  %v619_v19 = vmul.f32 %v1972_v55, %v2594_v33  ;;  %v2961_v55 = vld [vmem:[#allocation31_spill] sm:$0xff] }
 0x11d   : > { %v455_v28 = vadd.f32 %v2894_v38, %v445_v62  ;;  %v609_v58 = vadd.f32 %v601_v63, %v591_v60  ;;  %v637_v23 = vmul.f32 %v2895_v18, %v2600_v59  ;;  %v691_v14 = vmul.f32 %v2958_v2, %v2583_v50  ;;  %v2968_v62 = vld [vmem:[#allocation40_spill] sm:$0xff] }
 0x11e   : > { %v2645_v42 = vadd.f32 %v1072_v8, %v980_v41  ;;  %v381_v46 = vmul.f32 %v2959_v53, %v371_v25  ;;  %v545_v36 = vadd.f32 %v537_v17, %v527_v4  ;;  %v701_v12 = vmul.f32 %v2960_v3, %v2586_v52 }
 0x11f   : > { %v463_v31 = vmax.f32 %v455_v28, 0.0  ;;  %v627_v51 = vadd.f32 %v619_v19, %v609_v58  ;;  %v719_v38 = vmul.f32 %v2961_v55, %v2594_v33  ;;  %v737_v24 = vmul.f32 %v2962_v32, %v2600_v59 }
 0x120   : > { %1094 = vmax.xlane.f32.xlu0 %v2645_v42  ;;  %v555_v18 = vadd.f32 %v2951_v20, %v545_v36  ;;  %v709_v30 = vadd.f32 %v701_v12, %v691_v14  ;;  %v791_v29 = vmul.f32 %v2952_v6, %v2583_v50  ;;  %v801_v16 = vmul.f32 %v2963_v61, %v2586_v52  ;;  %v2967_v20 = vld [vmem:[#allocation39_spill] sm:$0xff]  ;;  %v2970_v61 = vld [vmem:[#allocation22_spill] sm:$0xff] }
 0x121   : > { %v473_v35 = vmul.f32 %v2964_v22, %v463_v31  ;;  %v645_v39 = vadd.f32 %v637_v23, %v627_v51  ;;  %v819_v5 = vmul.f32 %v2965_v43, %v2594_v33  ;;  %v837_v40 = vmul.f32 %v2966_v44, %v2600_v59  ;;  %v2972_v44 = vld [vmem:[#allocation28_spill] sm:$0xff] }
 0x122   : > { %v563_v1 = vmax.f32 %v555_v18, 0.0  ;;  %v727_v13 = vadd.f32 %v719_v38, %v709_v30  ;;  %v809_v47 = vadd.f32 %v801_v16, %v791_v29  ;;  %v891_v17 = vmul.f32 %v2967_v20, %v2583_v50  ;;  %v2969_v18 = vld [vmem:[#allocation46_spill] sm:$0xff]  ;;  %v2973_v20 = vld [vmem:[#allocation16_spill] sm:$0xff] }
 0x123   : > { %v481_v41 = vadd.f32 %v473_v35, %v381_v46  ;;  %v655_v6 = vadd.f32 %v2944_v48, %v645_v39  ;;  %v901_v60 = vmul.f32 %v2968_v62, %v2586_v52  ;;  %v919_v63 = vmul.f32 %v2957_v21, %v2594_v33  ;;  %v2971_v35 = vld [vmem:[#allocation26_spill] sm:$0xff] }
 0x124   : > { %v573_v8 = vmul.f32 %v2931_v11, %v563_v1  ;;  %v745_v25 = vadd.f32 %v737_v24, %v727_v13  ;;  %v827_v4 = vadd.f32 %v819_v5, %v809_v47  ;;  %v937_v19 = vmul.f32 %v2945_v27, %v2600_v59 }
 0x125   : > { %v663_v28 = vmax.f32 %v655_v6, 0.0  ;;  %v909_v58 = vadd.f32 %v901_v60, %v891_v17  ;;  %v991_v23 = vmul.f32 %v2918_v9, %v2583_v50  ;;  %v1001_v48 = vmul.f32 %v2932_v49, %v2586_v52  ;;  %v2974_v60 = vld [vmem:[#allocation18_spill] sm:$0xff] }
 0x126   : > { %v581_v2 = vadd.f32 %v573_v8, %v481_v41  ;;  %v755_v14 = vadd.f32 %v2933_v26, %v745_v25  ;;  %v845_v53 = vadd.f32 %v837_v40, %v827_v4  ;;  %v1019_v11 = vmul.f32 %v2921_v7, %v2594_v33 }
 0x127   : > { %v673_v21 = vmul.f32 %v2906_v37, %v663_v28  ;;  %v927_v46 = vadd.f32 %v919_v63, %v909_v58  ;;  %v1009_v36 = vadd.f32 %v1001_v48, %v991_v23  ;;  %v1037_v27 = vmul.f32 %v2102_v0, %v2600_v59 }
 0x128   : > { %v763_v3 = vmax.f32 %v755_v14, 0.0  ;;  %v855_v9 = vadd.f32 %v2934_v45, %v845_v53 }
 0x129   : > { %v681_v50 = vadd.f32 %v673_v21, %v581_v2  ;;  %v945_v12 = vadd.f32 %v937_v19, %v927_v46  ;;  %v1027_v49 = vadd.f32 %v1019_v11, %v1009_v36 }
 0x12a   : > { %v773_v52 = vmul.f32 %v2020_v15, %v763_v3  ;;  %v863_v26 = vmax.f32 %v855_v9, 0.0 }
 0x12b   : > { %v955_v31 = vadd.f32 %v2079_v56, %v945_v12  ;;  %v1045_v51 = vadd.f32 %v1037_v27, %v1027_v49 }
 0x12c   : > { %v781_v7 = vadd.f32 %v773_v52, %v681_v50  ;;  %v873_v37 = vmul.f32 %v2050_v34, %v863_v26 }
 0x12d   : > { %v963_v33 = vmax.f32 %v955_v31, 0.0  ;;  %v1055_v55 = vadd.f32 %v2107_v57, %v1045_v51 }
 0x12e   : > { %v881_v38 = vadd.f32 %v873_v37, %v781_v7 }
 0x12f   : > { %v973_v0 = vmul.f32 %v2081_v54, %v963_v33  ;;  %v1063_v59 = vmax.f32 %v1055_v55, 0.0 }
 0x131   : > { %v981_v45 = vadd.f32 %v973_v0, %v881_v38  ;;  %v1073_v32 = vmul.f32 %v2109_v10, %v1063_v59 }
 0x133   : > { %v1081_v24 = vadd.f32 %v1073_v32, %v981_v45 }
 0x135   : > { %1096 = vmax.xlane.f32.xlu1 %v1081_v24 }
 0x136   : > { %v1083_v15 = vpop.xlane.xlu0 %1082 }
 0x137   : > { %v1098_v30 = vsub.f32 %v2969_v18, %v1083_v15 }
 0x139   : > { %v1106_v56 = vmul.f32 1.442695, %v1098_v30 }
 0x13b   : > { %1430 = vpow2.f32 %v1106_v56 }
 0x13d   : > { %v1087_v29 = vpop.xlane.xlu1 %1086 }
 0x13e   : > { %v1100_v34 = vsub.f32 %v2970_v61, %v1087_v29 }
 0x140   : > { %v1110_v16 = vmul.f32 1.442695, %v1100_v34 }
 0x142   : > { %1432 = vpow2.f32 %v1110_v16 }
 0x148   : > { %v1431_v57 = vpop.eup %1430 }
 0x149   : > { %1122 = vadd.xlane.f32.xlu0 %v1431_v57 }
 0x14f   : > { %v1433_v22 = vpop.eup %1432 }
 0x150   : > { %1126 = vadd.xlane.f32.xlu0 %v1433_v22 }
 0x151   : > { %v1085_v54 = vpop.xlane.xlu0 %1084 }
 0x152   : > { %v1099_v39 = vsub.f32 %v2971_v35, %v1085_v54 }
 0x154   : > { %v1108_v10 = vmul.f32 1.442695, %v1099_v39 }
 0x156   : > { %1434 = vpow2.f32 %v1108_v10 }
 0x163   : > { %v1435_v43 = vpop.eup %1434 }
 0x164   : > { %1124 = vadd.xlane.f32.xlu1 %v1435_v43 }
 0x167   : > { %v1089_v5 = vpop.xlane.xlu1 %1088 }
 0x168   : > { %v1101_v40 = vsub.f32 %v2972_v44, %v1089_v5 }
 0x16a   : > { %v1112_v1 = vmul.f32 1.442695, %v1101_v40 }
 0x16c   : > { %1436 = vpow2.f32 %v1112_v1 }
 0x179   : > { %v1437_v13 = vpop.eup %1436 }
 0x17a   : > { %1128 = vadd.xlane.f32.xlu1 %v1437_v13 }
 0x17d   : > { %v1091_v47 = vpop.xlane.xlu0 %1090 }
 0x17e   : > { %v1102_v17 = vsub.f32 %v2973_v20, %v1091_v47 }
 0x180   : > { %v1114_v41 = vmul.f32 1.442695, %v1102_v17 }
 0x182   : > { %1438 = vpow2.f32 %v1114_v41 }
 0x18f   : > { %v1439_v6 = vpop.eup %1438 }
 0x190   : > { %1130 = vadd.xlane.f32.xlu0 %v1439_v6 }
 0x193   : > { %v1093_v62 = vpop.xlane.xlu1 %1092 }
 0x194   : > { %v1103_v63 = vsub.f32 %v2974_v60, %v1093_v62 }
 0x196   : > { %v1116_v8 = vmul.f32 1.442695, %v1103_v63 }
 0x198   : > { %1440 = vpow2.f32 %v1116_v8 }
 0x1a5   : > { %v1441_v25 = vpop.eup %1440 }
 0x1a6   : > { %1132 = vadd.xlane.f32.xlu1 %v1441_v25 }
 0x1a9   : > { %v1095_v4 = vpop.xlane.xlu0 %1094 }
 0x1aa   : > { %v1104_v19 = vsub.f32 %v2645_v42, %v1095_v4 }
 0x1ac   : > { %v1118_v28 = vmul.f32 1.442695, %v1104_v19 }
 0x1ae   : > { %1442 = vpow2.f32 %v1118_v28 }
 0x1bb   : > { %v1443_v58 = vpop.eup %1442 }
 0x1bc   : > { %1134 = vadd.xlane.f32.xlu0 %v1443_v58 }
 0x1be   : > { %v1097_v23 = vpop.xlane.xlu1 %1096 }
 0x1bf   : > { %v1105_v48 = vsub.f32 %v1081_v24, %v1097_v23 }
 0x1c1   : > { %v1120_v2 = vmul.f32 1.442695, %v1105_v48 }
 0x1c3   : > { %1444 = vpow2.f32 %v1120_v2 }
 0x1d0   : > { %v1445_v14 = vpop.eup %1444 }
 0x1d1   : > { %1136 = vadd.xlane.f32.xlu1 %v1445_v14 }
 0x1d2   : > { %v1123_v53 = vpop.xlane.xlu0 %1122 }
 0x1d3   : > { %1446 = vrcp.f32 %v1123_v53 }
 0x1d9   : > { %v1127_v11 = vpop.xlane.xlu0 %1126 }
 0x1da   : > { %1448 = vrcp.f32 %v1127_v11 }
 0x1e0   : > { %v1447_v21 = vpop.eup %1446 }
 0x1e1   : > { %v1146_v46 = vmul.f32 %v1447_v21, %v1431_v57 }
 0x1e3   : > { %1154 = vst [vmem:[%s2700_s8] sm:$0xff] %v1146_v46 }
 0x1e7   : > { %v1449_v42 = vpop.eup %1448 }
 0x1e8   : > { %v1148_v36 = vmul.f32 %v1449_v42, %v1433_v22 }
 0x1ea   : > { %1156 = vst [vmem:[%s2700_s8 + $0x10] sm:$0xff] %v1148_v36 }
 0x1ed   : > { %v1125_v27 = vpop.xlane.xlu1 %1124 }
 0x1ee   : > { %1450 = vrcp.f32 %v1125_v27 }
 0x1fb   : > { %v1451_v3 = vpop.eup %1450 }
 0x1fc   : > { %v1147_v9 = vmul.f32 %v1451_v3, %v1435_v43 }
 0x1fe   : > { %1155 = vst [vmem:[%s2700_s8 + $0x8] sm:$0xff] %v1147_v9 }
 0x203   : > { %v1129_v50 = vpop.xlane.xlu1 %1128 }
 0x204   : > { %1452 = vrcp.f32 %v1129_v50 }
 0x211   : > { %v1453_v12 = vpop.eup %1452 }
 0x212   : > { %v1149_v49 = vmul.f32 %v1453_v12, %v1437_v13 }
 0x214   : > { %1157 = vst [vmem:[%s2700_s8 + $0x18] sm:$0xff] %v1149_v49 }
 0x219   : > { %v1131_v52 = vpop.xlane.xlu0 %1130 }
 0x21a   : > { %1454 = vrcp.f32 %v1131_v52 }
 0x227   : > { %v1455_v26 = vpop.eup %1454 }
 0x228   : > { %v1150_v31 = vmul.f32 %v1455_v26, %v1439_v6 }
 0x22a   : > { %1158 = vst [vmem:[%s2700_s8 + $0x20] sm:$0xff] %v1150_v31 }
 0x22f   : > { %v1133_v51 = vpop.xlane.xlu1 %1132 }
 0x230   : > { %1456 = vrcp.f32 %v1133_v51 }
 0x23d   : > { %v1457_v7 = vpop.eup %1456 }
 0x23e   : > { %v1151_v37 = vmul.f32 %v1457_v7, %v1441_v25 }
 0x240   : > { %1159 = vst [vmem:[%s2700_s8 + $0x28] sm:$0xff] %v1151_v37 }
 0x245   : > { %v1135_v33 = vpop.xlane.xlu0 %1134 }
 0x246   : > { %1458 = vrcp.f32 %v1135_v33 }
 0x253   : > { %v1459_v55 = vpop.eup %1458 }
 0x254   : > { %v1152_v38 = vmul.f32 %v1459_v55, %v1443_v58 }
 0x256   : > { %1160 = vst [vmem:[%s2700_s8 + $0x30] sm:$0xff] %v1152_v38 }
 0x25a   : > { %v1137_v0 = vpop.xlane.xlu1 %1136 }
 0x25b   : > { %1460 = vrcp.f32 %v1137_v0 }
 0x268   : > { %v1461_v59 = vpop.eup %1460 }
 0x269   : > { %v1153_v45 = vmul.f32 %v1461_v59, %v1445_v14 }
 0x26b   : > { %1161 = vst [vmem:[%s2700_s8 + $0x38] sm:$0xff] %v1153_v45 }
 0x26c   : > { %1548 = shalt.err (!%p1545_p2)
}
 0x26d   : > { %s1549_s13 = scalar_lea.hbm %s2714_s29, 1024  ;;  %s1553_s21 = scalar_lea.hbm %s2764_s4, 2048 }
 0x26e   : > { %p1550_p1 = scmp.ne.s32.totalorder %s2714_s29, %s1549_s13  ;;  %p1554_p5 = scmp.lt.s32.totalorder %s2714_s29, %s2764_s4 }
 0x26f   : > { %p1555_p4 = scmp.lt.s32.totalorder %s1553_s21, %s1549_s13 }
 0x270   : > { %p1551_p9 = pnand %p1550_p1, %p2975_p13 }
 0x271   : > { %p1556_p6 = por %p1555_p4, %p1554_p5 }
 0x272   : > { %p1552_p11 = pneg %p1551_p9 }
 0x274   : > { %p1557_p8 = pnand %p1556_p6, %p1552_p11 }
 0x276   : > { %1560 = shalt.err (!%p1557_p8)
}
 0x277   : > { %s1616_s8 = smov 128   ;;  %s1617_s9 = smov 8  }
 0x278   : > { %1363 = dma.vmem_to_hbm [thread:$0]  (%p2975_p13), %s2716_s10, 1024, %s2714_s29, %s1163_s30, %s1616_s8, %s1616_s8, %s1617_s9  }
 0x279 PF: > { %s1191_s28 = sand.u32 1, %s1595_s15   ;;  %p2976_p7 = scmp.ne.s32.totalorder %s2850_s22, 0 }
 0x27a   : > { %p2977_p10 = scmp.ge.s32.totalorder %s1607_s18, 2  ;;  %s1192_s27 = scalar_lea.sflag [#allocation4], %s1191_s28 }
 0x27c   : > { %p1380_p12 = pnand %p2977_p10, %p2976_p7 }
 0x27e   : > { %p1381_p0 = pneg %p1380_p12 }
 0x280   : > { %1590 = dma.done.wait (%p1381_p0), %s1192_s27, 1024  }
 0x281   : > { %1592 = vsyncadd (%p1381_p0), %s1192_s27, 4294966272  ;;  %p19_p3 = scmp.ge.s32.totalorder %s1730_s14, 4   ;;  %s2978_s15 = smov %s1599_s16 }
 0x282   : > { %s2979_s16 = smov %s1603_s17  ;;  %s2980_s17 = smov %s1740_s24 }
 0x283   : > { %s2981_s18 = smov %s1730_s14  ;;  %21 = sbr.rel (!%p19_p3) target bundleno = 7 (0x7), region = 94 }
 0x288   :  { %1197 = vsyncpa [#allocation3], 1 }
 0x289   :  { %1199 = vsyncpa [#allocation3 + $0x1], 1 }
 0x28a   :  { %1200 = vsyncpa [#allocation4], 1 }
 0x28b   :  { %1202 = vsyncpa [#allocation4 + $0x1], 1 }
 0x28c   :  { %1203 = vsyncpa [#allocation5], 1 }
 0x28d   :  { %1205 = vsyncpa [#allocation5 + $0x1], 1 }
 0x28e   :  { %1206 = vsyncpa [#allocation8], 1 }

</bundles_post_ra>
